<compile_context>
chip_gen: v7x
topology: tpu7x:2x2x1
jax: 0.10.0
libtpu: 0.0.40
codegen_flags: <defaults>
</compile_context>

<pallas_src>
import functools

import jax
import jax.numpy as jnp
from jax.experimental import pallas as pl
from jax.experimental.pallas import tpu as pltpu

BN_EPS = 1e-5
LANE = 128
SUBLANE = 8
MAX_TILE_ROWS = 2048


def _round_up(x, m):
    return ((x + m - 1) // m) * m


def _vmem_capacity_bytes():
    try:
        cap = int(getattr(pltpu.get_tpu_info(), "vmem_capacity_bytes", 0))
        if cap > 0:
            return cap
    except Exception:
        pass
    return 64 * 1024 * 1024  # v7x-safe fallback


def _choose_tile_rows(m, cpads, mm_bytes, vmem_budget_bytes):
    """Largest M-tile (rows) whose per-call VMEM footprint fits the budget."""
    per_row = 0
    fixed = 2 << 20
    for l in range(len(cpads) - 1):
        cin, cout = cpads[l], cpads[l + 1]
        pr = 2 * mm_bytes * (cin + cout) + 4 * cout  # dbl-buffered in/out acts + live f32 y
        if l == 0:
            pr += mm_bytes * cin                     # lane-padding scratch of the raw input
        per_row = max(per_row, pr)
        fixed = max(fixed, 2 * mm_bytes * cin * cout + (2 << 20))
    per_row = max(per_row, 2 * mm_bytes * cpads[-1] + 3 * 4 * cpads[-1])  # final apply call
    tm = (vmem_budget_bytes - fixed) // max(per_row, 1)
    tm = int(max(SUBLANE, min(tm, MAX_TILE_ROWS)))
    tm = (tm // SUBLANE) * SUBLANE
    tm = min(tm, _round_up(m, SUBLANE))
    return max(tm, SUBLANE)


# ------------------------------ Pallas kernels --------------------------------
def _make_first_kernel(c0, c0pad, mm_dtype):
    """Layer 0: lane-pad x inside VMEM, matmul, emit y (mm_dtype) + per-tile sum/sumsq."""
    pad_lanes = c0 != c0pad

    def kernel(x_ref, w_ref, y_ref, st_ref, *scratch):
        if pad_lanes:
            (xpad_ref,) = scratch
            # Re-zero the pad lanes every tile: cheap, and safe under megacore
            # ("parallel" M axis => program 0 may not run on this core).
            xpad_ref[:, c0:c0pad] = jnp.zeros(
                (xpad_ref.shape[0], c0pad - c0), mm_dtype)
            xpad_ref[:, 0:c0] = x_ref[...].astype(mm_dtype)
            xin = xpad_ref[...]
        else:
            xin = x_ref[...].astype(mm_dtype)
        y = jnp.dot(xin, w_ref[...], preferred_element_type=jnp.float32)
        # Padded rows of x are zero and there is no conv bias, so they contribute
        # exactly 0 to the stats (divided by the TRUE M outside the kernel).
        st_ref[0, 0:1, :] = jnp.sum(y, axis=0, keepdims=True)
        st_ref[0, 1:2, :] = jnp.sum(y * y, axis=0, keepdims=True)
        y_ref[...] = y.astype(mm_dtype)

    return kernel


def _make_mid_kernel(tm, m_true, m_rows, mm_dtype):
    """BN+ReLU of layer l (from the stored y_l copy) fused with the matmul of l+1."""
    mask_rows = m_rows != m_true

    def kernel(y_ref, sc_ref, sh_ref, w_ref, y2_ref, st_ref):
        a = jnp.maximum(
            y_ref[...].astype(jnp.float32) * sc_ref[...] + sh_ref[...], 0.0)
        if mask_rows:
            rows = pl.program_id(0) * tm + jax.lax.broadcasted_iota(
                jnp.int32, (tm, 1), 0)
            a = jnp.where(rows < m_true, a, 0.0)  # keep pad rows at 0 for next stats
        y2 = jnp.dot(a.astype(mm_dtype), w_ref[...],
                     preferred_element_type=jnp.float32)
        st_ref[0, 0:1, :] = jnp.sum(y2, axis=0, keepdims=True)
        st_ref[0, 1:2, :] = jnp.sum(y2 * y2, axis=0, keepdims=True)
        y2_ref[...] = y2.astype(mm_dtype)

    return kernel


def _make_last_kernel(c_out):
    """Final BN+ReLU; emits only the true c_out lanes in f32."""

    def kernel(y_ref, sc_ref, sh_ref, o_ref):
        y = y_ref[:, 0:c_out].astype(jnp.float32)
        o_ref[...] = jnp.maximum(y * sc_ref[...] + sh_ref[...], 0.0).astype(o_ref.dtype)

    return kernel


# --------------------------- between-call BN glue ------------------------------
def _bn_scale_shift(stats_partial, gamma, beta, m):
    """Combine per-tile (sum, sumsq) partials into folded BN scale/shift (f32)."""
    s = jnp.sum(stats_partial[:, 0, :], axis=0)
    ss = jnp.sum(stats_partial[:, 1, :], axis=0)
    inv_m = 1.0 / float(m)
    mean = s * inv_m
    var = jnp.maximum(ss * inv_m - mean * mean, 0.0)
    scale = gamma[0] * jax.lax.rsqrt(var + BN_EPS)
    shift = beta[0] - mean * scale
    return scale[None, :], shift[None, :]


# ------------------------------- fused forward ---------------------------------
@functools.partial(jax.jit, static_argnames=("tm", "c_out", "vmem_limit"))
def _forward(features, weights, gammas, betas, *, tm, c_out, vmem_limit):
    n, c0, h, w = features.shape
    m = n * h * w
    num_layers = len(weights)
    mm_dtype = weights[0].dtype
    mt = -(-m // tm)
    m_rows = mt * tm

    cp = pltpu.CompilerParams(
        dimension_semantics=("parallel",),  # v7x: both TensorCores split the M tiles
        vmem_limit_bytes=vmem_limit,
    )

    # NCHW -> row-major (M, Cin); rows zero-padded to a multiple of the tile.
    x = jnp.transpose(features, (0, 2, 3, 1)).reshape(m, c0)
    if m_rows != m:
        x = jnp.pad(x, ((0, m_rows - m), (0, 0)))

    # ---- layer 0: matmul + per-tile BN stats -----------------------------------
    c0pad, c1pad = weights[0].shape
    y, st = pl.pallas_call(
        _make_first_kernel(c0, c0pad, mm_dtype),
        grid=(mt,),
        in_specs=[
            pl.BlockSpec((tm, c0), lambda i: (i, 0)),
            pl.BlockSpec((c0pad, c1pad), lambda i: (0, 0)),
        ],
        out_specs=(
            pl.BlockSpec((tm, c1pad), lambda i: (i, 0)),
            pl.BlockSpec((1, 2, c1pad), lambda i: (i, 0, 0)),
        ),
        out_shape=(
            jax.ShapeDtypeStruct((m_rows, c1pad), mm_dtype),
            jax.ShapeDtypeStruct((mt, 2, c1pad), jnp.float32),
        ),
        scratch_shapes=(
            [pltpu.VMEM((tm, c0pad), mm_dtype)] if c0 != c0pad else []
        ),
        compiler_params=cp,
    )(x, weights[0])
    scale, shift = _bn_scale_shift(st, gammas[0], betas[0], m)

    # ---- middle layers: BN+ReLU of layer l fused with the matmul of layer l+1 --
    mid_kernel = _make_mid_kernel(tm, m, m_rows, mm_dtype)
    for l in range(1, num_layers):
        cin_pad, cout_pad = weights[l].shape
        y, st = pl.pallas_call(
            mid_kernel,
            grid=(mt,),
            in_specs=[
                pl.BlockSpec((tm, cin_pad), lambda i: (i, 0)),
                pl.BlockSpec((1, cin_pad), lambda i: (0, 0)),
                pl.BlockSpec((1, cin_pad), lambda i: (0, 0)),
                pl.BlockSpec((cin_pad, cout_pad), lambda i: (0, 0)),
            ],
            out_specs=(
                pl.BlockSpec((tm, cout_pad), lambda i: (i, 0)),
                pl.BlockSpec((1, 2, cout_pad), lambda i: (i, 0, 0)),
            ),
            out_shape=(
                jax.ShapeDtypeStruct((m_rows, cout_pad), mm_dtype),
                jax.ShapeDtypeStruct((mt, 2, cout_pad), jnp.float32),
            ),
            compiler_params=cp,
        )(y, scale, shift, weights[l])
        scale, shift = _bn_scale_shift(st, gammas[l], betas[l], m)

    # ---- final BN+ReLU, emitted at the TRUE output width in f32 ----------------
    cl_pad = weights[-1].shape[1]
    out2d = pl.pallas_call(
        _make_last_kernel(c_out),
        grid=(mt,),
        in_specs=[
            pl.BlockSpec((tm, cl_pad), lambda i: (i, 0)),
            pl.BlockSpec((1, c_out), lambda i: (0, 0)),
            pl.BlockSpec((1, c_out), lambda i: (0, 0)),
        ],
        out_specs=pl.BlockSpec((tm, c_out), lambda i: (i, 0)),
        out_shape=jax.ShapeDtypeStruct((m_rows, c_out), jnp.float32),
        compiler_params=cp,
    )(y, scale[:, :c_out], shift[:, :c_out])

    out = out2d[:m].reshape(n, h, w, c_out)
    return jnp.transpose(out, (0, 3, 1, 2))


# --------------------------- parameter creation -------------------------------
def init_shared_mlp(key, mlp_spec):
    """nn.Conv2d default init (U(+-1/sqrt(fan_in))) and BatchNorm2d defaults."""
    layers = []
    for i in range(len(mlp_spec) - 1):
        key, kw, kb = jax.random.split(key, 3)
        cin, cout = mlp_spec[i], mlp_spec[i + 1]
        bound = 1.0 / (cin ** 0.5)                  # kernel_size 1x1 -> fan_in = cin
        wgt = jax.random.uniform(kw, (cout, cin), jnp.float32, -bound, bound)
        b = jax.random.uniform(kb, (cout,), jnp.float32, -bound, bound)
        gamma = jnp.ones((cout,), jnp.float32)
        beta = jnp.zeros((cout,), jnp.float32)
        layers.append((wgt, b, gamma, beta))
    return key, layers


def init_pointnet_sa(key, mlp):
    mlps = []
    for i in range(len(mlp) - 1):                   # matches PointnetSA.__init__
        key, layers = init_shared_mlp(key, mlp[i])
        mlps.append(layers)
    return key, mlps


def _effective_layers(mlps_params):
    """The (conv, bn) layers PointnetSA.forward actually executes, in order."""
    layers = []
    for i in range(len(mlps_params) - 1):           # range(len(self.mlps) - 1)
        shared = mlps_params[i]
        for j in range(len(shared) - 1):            # SharedMLP skips its last conv
            layers.append(shared[j])
    return layers


def pack_pointnet_params(mlps_params, matmul_dtype=jnp.bfloat16):
    """One-time packing: per-layer transpose + 128-lane channel padding."""
    layers = _effective_layers(mlps_params)
    if not layers:
        return None
    c_true = [layers[0][0].shape[1]] + [w.shape[0] for (w, _, _, _) in layers]
    cpads = [_round_up(c, LANE) for c in c_true]
    weights, gammas, betas = [], [], []
    for l, (wgt, _b_conv, gamma, beta) in enumerate(layers):
        cout, cin = wgt.shape
        # `_b_conv` (conv bias) dropped: training-mode BN subtracts the batch mean,
        # so a per-channel bias cancels exactly.
        wp = jnp.zeros((cpads[l], cpads[l + 1]), jnp.float32).at[:cin, :cout].set(wgt.T)
        gp = jnp.zeros((1, cpads[l + 1]), jnp.float32).at[0, :cout].set(gamma)
        bp = jnp.zeros((1, cpads[l + 1]), jnp.float32).at[0, :cout].set(beta)
        weights.append(wp.astype(matmul_dtype))
        gammas.append(gp)
        betas.append(bp)
    return {
        "weights": tuple(weights),
        "gammas": tuple(gammas),
        "betas": tuple(betas),
        "c_out": int(c_true[-1]),
        "cpads": tuple(cpads),
    }


def pointnet_sa_forward(features_nchw, packed):
    if packed is None:                              # zero executed layers -> identity
        return features_nchw
    n, _c, h, w = features_nchw.shape
    m = n * h * w
    mm_bytes = jnp.dtype(packed["weights"][0].dtype).itemsize
    cap = _vmem_capacity_bytes()
    tm = _choose_tile_rows(m, packed["cpads"], mm_bytes, int(0.6 * cap))
    return _forward(
        features_nchw, packed["weights"], packed["gammas"], packed["betas"],
        tm=tm, c_out=packed["c_out"], vmem_limit=int(0.75 * cap))


# ---------------------------- pure-JAX references -----------------------------
def _ref_forward_f32(features_nchw, mlps):
    """Faithful f32 reference of the PyTorch module (conv bias, two-pass BN var)."""
    n, c, h, w_dim = features_nchw.shape
    x = jnp.transpose(features_nchw, (0, 2, 3, 1)).reshape(n * h * w_dim, c)
    for (wgt, b, gamma, beta) in _effective_layers(mlps):
        y = x @ wgt.T + b[None, :]
        mean = jnp.mean(y, axis=0, keepdims=True)
        var = jnp.mean(jnp.square(y - mean), axis=0, keepdims=True)
        y = (y - mean) * jax.lax.rsqrt(var + BN_EPS)
        x = jnp.maximum(y * gamma[None, :] + beta[None, :], 0.0)
    c_out = x.shape[-1]
    return jnp.transpose(x.reshape(n, h, w_dim, c_out), (0, 3, 1, 2))


def _ref_forward_mirrored(features_nchw, mlps, matmul_dtype):
    """Reference mirroring the kernel math (matmul-dtype casts, no conv bias,
    one-pass sum/sumsq variance, BN applied to the stored matmul-dtype copy)."""
    n, c, h, w_dim = features_nchw.shape
    m = n * h * w_dim
    layers = _effective_layers(mlps)
    x = jnp.transpose(features_nchw, (0, 2, 3, 1)).reshape(m, c)
    a_mm = x.astype(matmul_dtype)
    inv_m = 1.0 / float(m)
    act = None
    for idx, (wgt, _b, gamma, beta) in enumerate(layers):
        y = jnp.dot(a_mm, wgt.T.astype(matmul_dtype),
                    preferred_element_type=jnp.float32)
        mean = jnp.sum(y, axis=0, keepdims=True) * inv_m
        var = jnp.maximum(jnp.sum(y * y, axis=0, keepdims=True) * inv_m
                          - mean * mean, 0.0)
        scale = gamma[None, :] * jax.lax.rsqrt(var + BN_EPS)
        shift = beta[None, :] - mean * scale
        y_q = y.astype(matmul_dtype).astype(jnp.float32)   # stored copy, read back
        act = jnp.maximum(y_q * scale + shift, 0.0)
        if idx < len(layers) - 1:
            a_mm = act.astype(matmul_dtype)
    c_out = act.shape[-1]
    return jnp.transpose(act.reshape(n, h, w_dim, c_out), (0, 3, 1, 2))


# ----------------------------------- main --------------------------------------
if __name__ == "__main__":
    key = jax.random.PRNGKey(0)

    # Effective layers actually executed by the module:
    #   4 -> 16 -> 32   (mlp[0], its last conv 32->32 is skipped)
    #   32 -> 64        (mlp[1], its last conv 64->64 is skipped)
    mlp = [[4, 16, 32, 32], [32, 64, 64], [64, 128], [128, 128]]
    key, params = init_pointnet_sa(key, mlp)

    n, c, h, w = 2, 4, 16, 16
    key, kx = jax.random.split(key)
    features = jax.random.normal(kx, (n, c, h, w), jnp.float32)

    # --- perf config: bf16 matmul inputs / bf16 streamed intermediates ---------
    packed_bf16 = pack_pointnet_params(params, matmul_dtype=jnp.bfloat16)
    out = jax.block_until_ready(pointnet_sa_forward(features, packed_bf16))
    assert out.shape == (n, 64, h, w), out.shape
    ref_m = jax.block_until_ready(_ref_forward_mirrored(features, params, jnp.bfloat16))
    err_m = float(jnp.max(jnp.abs(out - ref_m)))
    assert jnp.allclose(out, ref_m, atol=2e-3, rtol=2e-3), err_m

    # --- f32 config: tight check against the faithful PyTorch-equivalent ref ---
    packed_f32 = pack_pointnet_params(params, matmul_dtype=jnp.float32)
    out_f32 = jax.block_until_ready(pointnet_sa_forward(features, packed_f32))
    assert out_f32.shape == (n, 64, h, w), out_f32.shape
    ref_f = jax.block_until_ready(_ref_forward_f32(features, params))
    err_f = float(jnp.max(jnp.abs(out_f32 - ref_f)))
    assert jnp.allclose(out_f32, ref_f, atol=5e-4, rtol=5e-4), err_f

    # --- ragged case: M not a multiple of the tile -> exercises the row mask ---
    feats2 = jax.random.normal(jax.random.PRNGKey(1), (1, 4, 10, 10), jnp.float32)
    out2 = jax.block_until_ready(pointnet_sa_forward(feats2, packed_bf16))
    assert out2.shape == (1, 64, 10, 10), out2.shape
    ref2 = jax.block_until_ready(_ref_forward_mirrored(feats2, params, jnp.bfloat16))
    err2 = float(jnp.max(jnp.abs(out2 - ref2)))
    assert jnp.allclose(out2, ref2, atol=2e-3, rtol=2e-3), err2

    print("KERNEL_OK")
</pallas_src>

<mosaic_0001>
module attributes {stable_mosaic.version = 11 : i64} {
  func.func @kernel(%arg0: i32, %arg1: memref<512x4xf32, #tpu.memory_space<vmem>>, %arg2: memref<128x128xbf16, #tpu.memory_space<vmem>>, %arg3: memref<512x128xbf16, #tpu.memory_space<vmem>>, %arg4: memref<1x2x128xf32, #tpu.memory_space<vmem>>, %arg5: memref<512x128xbf16, #tpu.memory_space<vmem>>) attributes {dimension_semantics = [#tpu.dimension_semantics<parallel>], iteration_bounds = array<i64: 1>, scalar_prefetch = 0 : i64, scratch_operands = 1 : i64, tpu.core_type = #tpu.core_type<tc>, window_params = [{transform_indices = @transform_0, window_bounds = array<i64: 512, 4>}, {pipeline_mode = #tpu.pipeline_mode<synchronous>, transform_indices = @transform_1, window_bounds = array<i64: 128, 128>}, {transform_indices = @transform_2, window_bounds = array<i64: 512, 128>}, {transform_indices = @transform_3, window_bounds = array<i64: 1, 2, 128>}]} {
    %cst = arith.constant 0.000000e+00 : bf16
    %0 = vector.broadcast %cst : bf16 to vector<512x124xbf16>
    %c0 = arith.constant 0 : index
    %c4 = arith.constant 4 : index
    %1 = vector.load %arg5[%c0, %c4] : memref<512x128xbf16, #tpu.memory_space<vmem>>, vector<512x124xbf16>
    tpu.vector_store %arg5[%c0, %c4], %0 {strides = array<i32>} : memref<512x128xbf16, #tpu.memory_space<vmem>>, vector<512x124xbf16>,
    %c0_0 = arith.constant 0 : index
    %c0_1 = arith.constant 0 : index
    %2 = vector.load %arg1[%c0_0, %c0_1] : memref<512x4xf32, #tpu.memory_space<vmem>>, vector<512x4xf32>
    %3 = arith.truncf %2 : vector<512x4xf32> to vector<512x4xbf16>
    %c0_2 = arith.constant 0 : index
    %c0_3 = arith.constant 0 : index
    %4 = vector.load %arg5[%c0_2, %c0_3] : memref<512x128xbf16, #tpu.memory_space<vmem>>, vector<512x4xbf16>
    tpu.vector_store %arg5[%c0_2, %c0_3], %3 {strides = array<i32>} : memref<512x128xbf16, #tpu.memory_space<vmem>>, vector<512x4xbf16>,
    %c0_4 = arith.constant 0 : index
    %c0_5 = arith.constant 0 : index
    %5 = vector.load %arg5[%c0_4, %c0_5] : memref<512x128xbf16, #tpu.memory_space<vmem>>, vector<512x128xbf16>
    %c0_6 = arith.constant 0 : index
    %c0_7 = arith.constant 0 : index
    %6 = vector.load %arg2[%c0_6, %c0_7] : memref<128x128xbf16, #tpu.memory_space<vmem>>, vector<128x128xbf16>
    %cst_8 = arith.constant dense<0.000000e+00> : vector<512x128xf32>
    %7 = tpu.matmul %5, %6, %cst_8 {dimension_numbers = #tpu.dot_dimension_numbers<[1], [0], [0], [1], [0, 0, 1, 1], [], []>} : vector<512x128xbf16>, vector<128x128xbf16>, vector<512x128xf32> -> vector<512x128xf32>
    %cst_9 = arith.constant dense<0.000000e+00> : vector<128xf32>
    %8 = vector.multi_reduction <add>, %7, %cst_9 [0] : vector<512x128xf32> to vector<128xf32>
    %9 = vector.shape_cast %8 : vector<128xf32> to vector<1x128xf32>
    %c0_10 = arith.constant 0 : index
    %c0_11 = arith.constant 0 : index
    %c0_12 = arith.constant 0 : index
    %10 = vector.load %arg4[%c0_10, %c0_11, %c0_12] : memref<1x2x128xf32, #tpu.memory_space<vmem>>, vector<1x1x128xf32>
    %11 = vector.shape_cast %10 : vector<1x1x128xf32> to vector<1x128xf32>
    %12 = vector.shape_cast %9 : vector<1x128xf32> to vector<1x1x128xf32>
    tpu.vector_store %arg4[%c0_10, %c0_11, %c0_12], %12 {strides = array<i32>} : memref<1x2x128xf32, #tpu.memory_space<vmem>>, vector<1x1x128xf32>,
    %13 = arith.mulf %7, %7 : vector<512x128xf32>
    %cst_13 = arith.constant dense<0.000000e+00> : vector<128xf32>
    %14 = vector.multi_reduction <add>, %13, %cst_13 [0] : vector<512x128xf32> to vector<128xf32>
    %15 = vector.shape_cast %14 : vector<128xf32> to vector<1x128xf32>
    %c0_14 = arith.constant 0 : index
    %c1 = arith.constant 1 : index
    %c0_15 = arith.constant 0 : index
    %16 = vector.load %arg4[%c0_14, %c1, %c0_15] : memref<1x2x128xf32, #tpu.memory_space<vmem>>, vector<1x1x128xf32>
    %17 = vector.shape_cast %16 : vector<1x1x128xf32> to vector<1x128xf32>
    %18 = vector.shape_cast %15 : vector<1x128xf32> to vector<1x1x128xf32>
    tpu.vector_store %arg4[%c0_14, %c1, %c0_15], %18 {strides = array<i32>} : memref<1x2x128xf32, #tpu.memory_space<vmem>>, vector<1x1x128xf32>,
    %19 = arith.truncf %7 : vector<512x128xf32> to vector<512x128xbf16>
    %c0_16 = arith.constant 0 : index
    %c0_17 = arith.constant 0 : index
    %20 = vector.load %arg3[%c0_16, %c0_17] : memref<512x128xbf16, #tpu.memory_space<vmem>>, vector<512x128xbf16>
    tpu.vector_store %arg3[%c0_16, %c0_17], %19 {strides = array<i32>} : memref<512x128xbf16, #tpu.memory_space<vmem>>, vector<512x128xbf16>,
    return
  }
  func.func @transform_0(%arg0: i32) -> (i32, i32) {
    %c0_i32 = arith.constant 0 : i32
    %c0_i32_0 = arith.constant 0 : i32
    return %arg0, %c0_i32 : i32, i32
  }
  func.func @transform_1(%arg0: i32) -> (i32, i32) {
    %c0_i32 = arith.constant 0 : i32
    %c0_i32_0 = arith.constant 0 : i32
    %c0_i32_1 = arith.constant 0 : i32
    return %c0_i32, %c0_i32_0 : i32, i32
  }
  func.func @transform_2(%arg0: i32) -> (i32, i32) {
    %c0_i32 = arith.constant 0 : i32
    %c0_i32_0 = arith.constant 0 : i32
    return %arg0, %c0_i32 : i32, i32
  }
  func.func @transform_3(%arg0: i32) -> (i32, i32, i32) {
    %c0_i32 = arith.constant 0 : i32
    %c0_i32_0 = arith.constant 0 : i32
    %c0_i32_1 = arith.constant 0 : i32
    return %arg0, %c0_i32, %c0_i32_0 : i32, i32, i32
  }
}

module attributes {stable_mosaic.version = 11 : i64} {
  func.func @kernel(%arg0: i32, %arg1: memref<512x128xbf16, #tpu.memory_space<vmem>>, %arg2: memref<1x128xf32, #tpu.memory_space<vmem>>, %arg3: memref<1x128xf32, #tpu.memory_space<vmem>>, %arg4: memref<128x128xbf16, #tpu.memory_space<vmem>>, %arg5: memref<512x128xbf16, #tpu.memory_space<vmem>>, %arg6: memref<1x2x128xf32, #tpu.memory_space<vmem>>) attributes {dimension_semantics = [#tpu.dimension_semantics<parallel>], iteration_bounds = array<i64: 1>, scalar_prefetch = 0 : i64, scratch_operands = 0 : i64, tpu.core_type = #tpu.core_type<tc>, window_params = [{transform_indices = @transform_0, window_bounds = array<i64: 512, 128>}, {pipeline_mode = #tpu.pipeline_mode<synchronous>, transform_indices = @transform_1, window_bounds = array<i64: 1, 128>}, {pipeline_mode = #tpu.pipeline_mode<synchronous>, transform_indices = @transform_2, window_bounds = array<i64: 1, 128>}, {pipeline_mode = #tpu.pipeline_mode<synchronous>, transform_indices = @transform_3, window_bounds = array<i64: 128, 128>}, {transform_indices = @transform_4, window_bounds = array<i64: 512, 128>}, {transform_indices = @transform_5, window_bounds = array<i64: 1, 2, 128>}]} {
    %c0 = arith.constant 0 : index
    %c0_0 = arith.constant 0 : index
    %0 = vector.load %arg1[%c0, %c0_0] : memref<512x128xbf16, #tpu.memory_space<vmem>>, vector<512x128xbf16>
    %1 = arith.extf %0 : vector<512x128xbf16> to vector<512x128xf32>
    %c0_1 = arith.constant 0 : index
    %c0_2 = arith.constant 0 : index
    %2 = vector.load %arg2[%c0_1, %c0_2] : memref<1x128xf32, #tpu.memory_space<vmem>>, vector<1x128xf32>
    %3 = vector.broadcast %2 : vector<1x128xf32> to vector<512x128xf32>
    %4 = arith.mulf %1, %3 : vector<512x128xf32>
    %c0_3 = arith.constant 0 : index
    %c0_4 = arith.constant 0 : index
    %5 = vector.load %arg3[%c0_3, %c0_4] : memref<1x128xf32, #tpu.memory_space<vmem>>, vector<1x128xf32>
    %6 = vector.broadcast %5 : vector<1x128xf32> to vector<512x128xf32>
    %7 = arith.addf %4, %6 : vector<512x128xf32>
    %cst = arith.constant 0.000000e+00 : f32
    %8 = vector.broadcast %cst : f32 to vector<512x128xf32>
    %9 = arith.maximumf %7, %8 : vector<512x128xf32>
    %10 = arith.truncf %9 : vector<512x128xf32> to vector<512x128xbf16>
    %c0_5 = arith.constant 0 : index
    %c0_6 = arith.constant 0 : index
    %11 = vector.load %arg4[%c0_5, %c0_6] : memref<128x128xbf16, #tpu.memory_space<vmem>>, vector<128x128xbf16>
    %cst_7 = arith.constant dense<0.000000e+00> : vector<512x128xf32>
    %12 = tpu.matmul %10, %11, %cst_7 {dimension_numbers = #tpu.dot_dimension_numbers<[1], [0], [0], [1], [0, 0, 1, 1], [], []>} : vector<512x128xbf16>, vector<128x128xbf16>, vector<512x128xf32> -> vector<512x128xf32>
    %cst_8 = arith.constant dense<0.000000e+00> : vector<128xf32>
    %13 = vector.multi_reduction <add>, %12, %cst_8 [0] : vector<512x128xf32> to vector<128xf32>
    %14 = vector.shape_cast %13 : vector<128xf32> to vector<1x128xf32>
    %c0_9 = arith.constant 0 : index
    %c0_10 = arith.constant 0 : index
    %c0_11 = arith.constant 0 : index
    %15 = vector.load %arg6[%c0_9, %c0_10, %c0_11] : memref<1x2x128xf32, #tpu.memory_space<vmem>>, vector<1x1x128xf32>
    %16 = vector.shape_cast %15 : vector<1x1x128xf32> to vector<1x128xf32>
    %17 = vector.shape_cast %14 : vector<1x128xf32> to vector<1x1x128xf32>
    tpu.vector_store %arg6[%c0_9, %c0_10, %c0_11], %17 {strides = array<i32>} : memref<1x2x128xf32, #tpu.memory_space<vmem>>, vector<1x1x128xf32>,
    %18 = arith.mulf %12, %12 : vector<512x128xf32>
    %cst_12 = arith.constant dense<0.000000e+00> : vector<128xf32>
    %19 = vector.multi_reduction <add>, %18, %cst_12 [0] : vector<512x128xf32> to vector<128xf32>
    %20 = vector.shape_cast %19 : vector<128xf32> to vector<1x128xf32>
    %c0_13 = arith.constant 0 : index
    %c1 = arith.constant 1 : index
    %c0_14 = arith.constant 0 : index
    %21 = vector.load %arg6[%c0_13, %c1, %c0_14] : memref<1x2x128xf32, #tpu.memory_space<vmem>>, vector<1x1x128xf32>
    %22 = vector.shape_cast %21 : vector<1x1x128xf32> to vector<1x128xf32>
    %23 = vector.shape_cast %20 : vector<1x128xf32> to vector<1x1x128xf32>
    tpu.vector_store %arg6[%c0_13, %c1, %c0_14], %23 {strides = array<i32>} : memref<1x2x128xf32, #tpu.memory_space<vmem>>, vector<1x1x128xf32>,
    %24 = arith.truncf %12 : vector<512x128xf32> to vector<512x128xbf16>
    %c0_15 = arith.constant 0 : index
    %c0_16 = arith.constant 0 : index
    %25 = vector.load %arg5[%c0_15, %c0_16] : memref<512x128xbf16, #tpu.memory_space<vmem>>, vector<512x128xbf16>
    tpu.vector_store %arg5[%c0_15, %c0_16], %24 {strides = array<i32>} : memref<512x128xbf16, #tpu.memory_space<vmem>>, vector<512x128xbf16>,
    return
  }
  func.func @transform_0(%arg0: i32) -> (i32, i32) {
    %c0_i32 = arith.constant 0 : i32
    %c0_i32_0 = arith.constant 0 : i32
    return %arg0, %c0_i32 : i32, i32
  }
  func.func @transform_1(%arg0: i32) -> (i32, i32) {
    %c0_i32 = arith.constant 0 : i32
    %c0_i32_0 = arith.constant 0 : i32
    %c0_i32_1 = arith.constant 0 : i32
    return %c0_i32, %c0_i32_0 : i32, i32
  }
  func.func @transform_2(%arg0: i32) -> (i32, i32) {
    %c0_i32 = arith.constant 0 : i32
    %c0_i32_0 = arith.constant 0 : i32
    %c0_i32_1 = arith.constant 0 : i32
    return %c0_i32, %c0_i32_0 : i32, i32
  }
  func.func @transform_3(%arg0: i32) -> (i32, i32) {
    %c0_i32 = arith.constant 0 : i32
    %c0_i32_0 = arith.constant 0 : i32
    %c0_i32_1 = arith.constant 0 : i32
    return %c0_i32, %c0_i32_0 : i32, i32
  }
  func.func @transform_4(%arg0: i32) -> (i32, i32) {
    %c0_i32 = arith.constant 0 : i32
    %c0_i32_0 = arith.constant 0 : i32
    return %arg0, %c0_i32 : i32, i32
  }
  func.func @transform_5(%arg0: i32) -> (i32, i32, i32) {
    %c0_i32 = arith.constant 0 : i32
    %c0_i32_0 = arith.constant 0 : i32
    %c0_i32_1 = arith.constant 0 : i32
    return %arg0, %c0_i32, %c0_i32_0 : i32, i32, i32
  }
}

module attributes {stable_mosaic.version = 11 : i64} {
  func.func @kernel(%arg0: i32, %arg1: memref<512x128xbf16, #tpu.memory_space<vmem>>, %arg2: memref<1x64xf32, #tpu.memory_space<vmem>>, %arg3: memref<1x64xf32, #tpu.memory_space<vmem>>, %arg4: memref<512x64xf32, #tpu.memory_space<vmem>>) attributes {dimension_semantics = [#tpu.dimension_semantics<parallel>], iteration_bounds = array<i64: 1>, scalar_prefetch = 0 : i64, scratch_operands = 0 : i64, tpu.core_type = #tpu.core_type<tc>, window_params = [{transform_indices = @transform_0, window_bounds = array<i64: 512, 128>}, {pipeline_mode = #tpu.pipeline_mode<synchronous>, transform_indices = @transform_1, window_bounds = array<i64: 1, 64>}, {pipeline_mode = #tpu.pipeline_mode<synchronous>, transform_indices = @transform_2, window_bounds = array<i64: 1, 64>}, {transform_indices = @transform_3, window_bounds = array<i64: 512, 64>}]} {
    %c0 = arith.constant 0 : index
    %c0_0 = arith.constant 0 : index
    %0 = vector.load %arg1[%c0, %c0_0] : memref<512x128xbf16, #tpu.memory_space<vmem>>, vector<512x64xbf16>
    %1 = arith.extf %0 : vector<512x64xbf16> to vector<512x64xf32>
    %c0_1 = arith.constant 0 : index
    %c0_2 = arith.constant 0 : index
    %2 = vector.load %arg2[%c0_1, %c0_2] : memref<1x64xf32, #tpu.memory_space<vmem>>, vector<1x64xf32>
    %3 = vector.broadcast %2 : vector<1x64xf32> to vector<512x64xf32>
    %4 = arith.mulf %1, %3 : vector<512x64xf32>
    %c0_3 = arith.constant 0 : index
    %c0_4 = arith.constant 0 : index
    %5 = vector.load %arg3[%c0_3, %c0_4] : memref<1x64xf32, #tpu.memory_space<vmem>>, vector<1x64xf32>
    %6 = vector.broadcast %5 : vector<1x64xf32> to vector<512x64xf32>
    %7 = arith.addf %4, %6 : vector<512x64xf32>
    %cst = arith.constant 0.000000e+00 : f32
    %8 = vector.broadcast %cst : f32 to vector<512x64xf32>
    %9 = arith.maximumf %7, %8 : vector<512x64xf32>
    %c0_5 = arith.constant 0 : index
    %c0_6 = arith.constant 0 : index
    %10 = vector.load %arg4[%c0_5, %c0_6] : memref<512x64xf32, #tpu.memory_space<vmem>>, vector<512x64xf32>
    tpu.vector_store %arg4[%c0_5, %c0_6], %9 {strides = array<i32>} : memref<512x64xf32, #tpu.memory_space<vmem>>, vector<512x64xf32>,
    return
  }
  func.func @transform_0(%arg0: i32) -> (i32, i32) {
    %c0_i32 = arith.constant 0 : i32
    %c0_i32_0 = arith.constant 0 : i32
    return %arg0, %c0_i32 : i32, i32
  }
  func.func @transform_1(%arg0: i32) -> (i32, i32) {
    %c0_i32 = arith.constant 0 : i32
    %c0_i32_0 = arith.constant 0 : i32
    %c0_i32_1 = arith.constant 0 : i32
    return %c0_i32, %c0_i32_0 : i32, i32
  }
  func.func @transform_2(%arg0: i32) -> (i32, i32) {
    %c0_i32 = arith.constant 0 : i32
    %c0_i32_0 = arith.constant 0 : i32
    %c0_i32_1 = arith.constant 0 : i32
    return %c0_i32, %c0_i32_0 : i32, i32
  }
  func.func @transform_3(%arg0: i32) -> (i32, i32) {
    %c0_i32 = arith.constant 0 : i32
    %c0_i32_0 = arith.constant 0 : i32
    return %arg0, %c0_i32 : i32, i32
  }
}

</mosaic_0001>

<bundles_post_ra>
// kernel: _forward.7
= control target key start
LH: loop header
LB: loop body
LE: loop exit
PB: predicated region body
PF: predicated region fallthrough
CT: control target
= control target key end

     0   :  { %vm349_vm0 = vcmask 523264   ;;  %s951_s0 = inlined_call_operand.vmem [shape: bf16[512,128], index: 0, kind: input, shape index: {}]   ;;  %s952_s1 = inlined_call_operand.vmem [shape: f32[1,64], index: 1, kind: input, shape index: {}]   ;;  %s953_s2 = inlined_call_operand.vmem [shape: f32[1,64], index: 2, kind: input, shape index: {}]   ;;  %s954_s3 = inlined_call_operand.hbm [shape: f32[512,64], index: 3, kind: output, shape index: {}]  }
   0x1   :  { %v433_v0 = vld [vmem:[%s951_s0] sm:$0xff]   ;;  %v560_v4 = vld [vmem:[%s951_s0 + $0x8] sm:$0xff]   ;;  %v561_v5 = vld [vmem:[%s951_s0 + $0x10] sm:$0xff]  }
   0x2   :  { %v647_v1 = vld [vmem:[%s952_s1] ss:$0 sm:$0xff]  ;;  %v434_v2 = vunpack.c.l.bf16 %v433_v0  ;;  %v435_v3 = vunpack.c.h.bf16 %v433_v0  ;;  %v562_v6 = vld [vmem:[%s951_s0 + $0x18] sm:$0xff]   ;;  %v438_v8 = vunpack.c.l.bf16 %v560_v4  ;;  %v439_v9 = vunpack.c.h.bf16 %v560_v4  ;;  %v564_v33 = vld [vmem:[%s951_s0 + $0x28] sm:$0xff]  }
   0x3   :  { %v661_v7 = vld [vmem:[%s953_s2] ss:$0 sm:$0xff]  ;;  %v442_v10 = vunpack.c.l.bf16 %v561_v5  ;;  %v443_v11 = vunpack.c.h.bf16 %v561_v5  ;;  %v446_v14 = vunpack.c.l.bf16 %v562_v6  ;;  %v447_v15 = vunpack.c.h.bf16 %v562_v6  ;;  %v565_v34 = vld [vmem:[%s951_s0 + $0x30] sm:$0xff]   ;;  %v566_v39 = vld [vmem:[%s951_s0 + $0x38] sm:$0xff]  }
   0x4   :  { %v150_v12 = vmul.f32 %v434_v2, %v647_v1  ;;  %v151_v13 = vmul.f32 %v435_v3, %v647_v1  ;;  %v152_v16 = vmul.f32 %v438_v8, %v647_v1  ;;  %v153_v17 = vmul.f32 %v439_v9, %v647_v1  ;;  %v563_v28 = vld [vmem:[%s951_s0 + $0x20] sm:$0xff]  }
   0x5   :  { %v154_v18 = vmul.f32 %v442_v10, %v647_v1  ;;  %v155_v19 = vmul.f32 %v443_v11, %v647_v1  ;;  %v156_v22 = vmul.f32 %v446_v14, %v647_v1  ;;  %v157_v23 = vmul.f32 %v447_v15, %v647_v1 }
   0x6   :  { %v221_v20 = vadd.f32 %v661_v7, %v150_v12  ;;  %v222_v21 = vadd.f32 %v661_v7, %v151_v13  ;;  %v223_v24 = vadd.f32 %v661_v7, %v152_v16  ;;  %v224_v25 = vadd.f32 %v661_v7, %v153_v17 }
   0x7   :  { %v225_v26 = vadd.f32 %v661_v7, %v154_v18  ;;  %v226_v27 = vadd.f32 %v661_v7, %v155_v19  ;;  %v227_v31 = vadd.f32 %v661_v7, %v156_v22  ;;  %v228_v32 = vadd.f32 %v661_v7, %v157_v23 }
   0x8   :  { %v285_v29 = vmax.f32 %v221_v20, 0.0  ;;  %v286_v30 = vmax.f32 %v222_v21, 0.0  ;;  %v287_v35 = vmax.f32 %v223_v24, 0.0  ;;  %v288_v36 = vmax.f32 %v224_v25, 0.0 }
   0x9   :  { %v289_v37 = vmax.f32 %v225_v26, 0.0  ;;  %v290_v38 = vmax.f32 %v226_v27, 0.0  ;;  %v291_v40 = vmax.f32 %v227_v31, 0.0  ;;  %v292_v41 = vmax.f32 %v228_v32, 0.0 }
   0xa   :  { %350 = vst.msk [vmem:[#allocation2] sm:$0xff] %vm349_vm0, %v285_v29  ;;  %351 = vst.msk [vmem:[#allocation2 + $0x8] sm:$0xff] %vm349_vm0, %v286_v30  ;;  %v450_v42 = vunpack.c.l.bf16 %v563_v28  ;;  %v451_v43 = vunpack.c.h.bf16 %v563_v28  ;;  %v454_v44 = vunpack.c.l.bf16 %v564_v33  ;;  %v455_v45 = vunpack.c.h.bf16 %v564_v33 }
   0xb   :  { %352 = vst.msk [vmem:[#allocation2 + $0x10] sm:$0xff] %vm349_vm0, %v287_v35  ;;  %353 = vst.msk [vmem:[#allocation2 + $0x18] sm:$0xff] %vm349_vm0, %v288_v36  ;;  %v458_v46 = vunpack.c.l.bf16 %v565_v34  ;;  %v459_v47 = vunpack.c.h.bf16 %v565_v34  ;;  %v462_v50 = vunpack.c.l.bf16 %v566_v39  ;;  %v463_v51 = vunpack.c.h.bf16 %v566_v39 }
   0xc   :  { %354 = vst.msk [vmem:[#allocation2 + $0x20] sm:$0xff] %vm349_vm0, %v289_v37  ;;  %355 = vst.msk [vmem:[#allocation2 + $0x28] sm:$0xff] %vm349_vm0, %v290_v38  ;;  %v158_v48 = vmul.f32 %v450_v42, %v647_v1  ;;  %v159_v49 = vmul.f32 %v451_v43, %v647_v1 }
   0xd   :  { %356 = vst.msk [vmem:[#allocation2 + $0x30] sm:$0xff] %vm349_vm0, %v291_v40  ;;  %357 = vst.msk [vmem:[#allocation2 + $0x38] sm:$0xff] %vm349_vm0, %v292_v41 }
   0xe   :  { %8 = vsyncpa [#allocation3], 0  ;;  %v160_v52 = vmul.f32 %v454_v44, %v647_v1  ;;  %v161_v53 = vmul.f32 %v455_v45, %v647_v1  ;;  %v162_v54 = vmul.f32 %v458_v46, %v647_v1  ;;  %v163_v55 = vmul.f32 %v459_v47, %v647_v1  ;;  %v567_v0 = vld [vmem:[%s951_s0 + $0x40] sm:$0xff]   ;;  %v568_v6 = vld [vmem:[%s951_s0 + $0x48] sm:$0xff]  }
   0xf   :  { %v229_v56 = vadd.f32 %v661_v7, %v158_v48  ;;  %v230_v57 = vadd.f32 %v661_v7, %v159_v49  ;;  %v164_v58 = vmul.f32 %v462_v50, %v647_v1  ;;  %v165_v59 = vmul.f32 %v463_v51, %v647_v1  ;;  %v569_v8 = vld [vmem:[%s951_s0 + $0x50] sm:$0xff]   ;;  %v570_v13 = vld [vmem:[%s951_s0 + $0x58] sm:$0xff]   ;;  %v571_v38 = vld [vmem:[%s951_s0 + $0x60] sm:$0xff]  }
  0x10   :  { %v231_v60 = vadd.f32 %v661_v7, %v160_v52  ;;  %v232_v61 = vadd.f32 %v661_v7, %v161_v53  ;;  %v233_v62 = vadd.f32 %v661_v7, %v162_v54  ;;  %v234_v63 = vadd.f32 %v661_v7, %v163_v55  ;;  %v572_v43 = vld [vmem:[%s951_s0 + $0x68] sm:$0xff]   ;;  %v573_v44 = vld [vmem:[%s951_s0 + $0x70] sm:$0xff]   ;;  %v574_v49 = vld [vmem:[%s951_s0 + $0x78] sm:$0xff]  }
  0x11   :  { %v293_v2 = vmax.f32 %v229_v56, 0.0  ;;  %v294_v3 = vmax.f32 %v230_v57, 0.0  ;;  %v235_v4 = vadd.f32 %v661_v7, %v164_v58  ;;  %v236_v5 = vadd.f32 %v661_v7, %v165_v59 }
  0x12   :  { %v295_v9 = vmax.f32 %v231_v60, 0.0  ;;  %v296_v10 = vmax.f32 %v232_v61, 0.0  ;;  %v297_v11 = vmax.f32 %v233_v62, 0.0  ;;  %v298_v12 = vmax.f32 %v234_v63, 0.0 }
  0x13   :  { %358 = vst.msk [vmem:[#allocation2 + $0x40] sm:$0xff] %vm349_vm0, %v293_v2  ;;  %359 = vst.msk [vmem:[#allocation2 + $0x48] sm:$0xff] %vm349_vm0, %v294_v3  ;;  %v299_v14 = vmax.f32 %v235_v4, 0.0  ;;  %v300_v15 = vmax.f32 %v236_v5, 0.0  ;;  %v466_v16 = vunpack.c.l.bf16 %v567_v0  ;;  %v467_v17 = vunpack.c.h.bf16 %v567_v0 }
  0x14   :  { %360 = vst.msk [vmem:[#allocation2 + $0x50] sm:$0xff] %vm349_vm0, %v295_v9  ;;  %361 = vst.msk [vmem:[#allocation2 + $0x58] sm:$0xff] %vm349_vm0, %v296_v10  ;;  %v470_v18 = vunpack.c.l.bf16 %v568_v6  ;;  %v471_v19 = vunpack.c.h.bf16 %v568_v6  ;;  %v474_v20 = vunpack.c.l.bf16 %v569_v8  ;;  %v475_v21 = vunpack.c.h.bf16 %v569_v8 }
  0x15   :  { %362 = vst.msk [vmem:[#allocation2 + $0x60] sm:$0xff] %vm349_vm0, %v297_v11  ;;  %363 = vst.msk [vmem:[#allocation2 + $0x68] sm:$0xff] %vm349_vm0, %v298_v12  ;;  %v166_v22 = vmul.f32 %v466_v16, %v647_v1  ;;  %v167_v23 = vmul.f32 %v467_v17, %v647_v1  ;;  %v478_v24 = vunpack.c.l.bf16 %v570_v13  ;;  %v479_v25 = vunpack.c.h.bf16 %v570_v13  ;;  %v575_v12 = vld [vmem:[%s951_s0 + $0x80] sm:$0xff]   ;;  %v576_v17 = vld [vmem:[%s951_s0 + $0x88] sm:$0xff]  }
  0x16   :  { %364 = vst.msk [vmem:[#allocation2 + $0x70] sm:$0xff] %vm349_vm0, %v299_v14  ;;  %365 = vst.msk [vmem:[#allocation2 + $0x78] sm:$0xff] %vm349_vm0, %v300_v15  ;;  %v168_v26 = vmul.f32 %v470_v18, %v647_v1  ;;  %v169_v27 = vmul.f32 %v471_v19, %v647_v1  ;;  %v170_v28 = vmul.f32 %v474_v20, %v647_v1  ;;  %v482_v52 = vunpack.c.l.bf16 %v571_v38  ;;  %v577_v18 = vld [vmem:[%s951_s0 + $0x90] sm:$0xff]  }
  0x17   :  { %v171_v29 = vmul.f32 %v475_v21, %v647_v1  ;;  %v237_v30 = vadd.f32 %v661_v7, %v166_v22  ;;  %v238_v31 = vadd.f32 %v661_v7, %v167_v23  ;;  %v172_v32 = vmul.f32 %v478_v24, %v647_v1  ;;  %v578_v23 = vld [vmem:[%s951_s0 + $0x98] sm:$0xff]  }
  0x18   :  { %v173_v33 = vmul.f32 %v479_v25, %v647_v1  ;;  %v239_v34 = vadd.f32 %v661_v7, %v168_v26  ;;  %v240_v35 = vadd.f32 %v661_v7, %v169_v27  ;;  %v241_v36 = vadd.f32 %v661_v7, %v170_v28 }
  0x19   :  { %v242_v37 = vadd.f32 %v661_v7, %v171_v29  ;;  %v301_v39 = vmax.f32 %v237_v30, 0.0  ;;  %v302_v40 = vmax.f32 %v238_v31, 0.0  ;;  %v243_v41 = vadd.f32 %v661_v7, %v172_v32 }
  0x1a   :  { %v244_v42 = vadd.f32 %v661_v7, %v173_v33  ;;  %v303_v45 = vmax.f32 %v239_v34, 0.0  ;;  %v304_v46 = vmax.f32 %v240_v35, 0.0  ;;  %v305_v47 = vmax.f32 %v241_v36, 0.0 }
  0x1b   :  { %v306_v48 = vmax.f32 %v242_v37, 0.0  ;;  %366 = vst.msk [vmem:[#allocation2 + $0x80] sm:$0xff] %vm349_vm0, %v301_v39  ;;  %367 = vst.msk [vmem:[#allocation2 + $0x88] sm:$0xff] %vm349_vm0, %v302_v40  ;;  %v307_v50 = vmax.f32 %v243_v41, 0.0  ;;  %v483_v53 = vunpack.c.h.bf16 %v571_v38  ;;  %v486_v54 = vunpack.c.l.bf16 %v572_v43 }
  0x1c   :  { %v308_v51 = vmax.f32 %v244_v42, 0.0  ;;  %368 = vst.msk [vmem:[#allocation2 + $0x90] sm:$0xff] %vm349_vm0, %v303_v45  ;;  %369 = vst.msk [vmem:[#allocation2 + $0x98] sm:$0xff] %vm349_vm0, %v304_v46  ;;  %v487_v55 = vunpack.c.h.bf16 %v572_v43  ;;  %v490_v56 = vunpack.c.l.bf16 %v573_v44  ;;  %v491_v57 = vunpack.c.h.bf16 %v573_v44 }
  0x1d   :  { %370 = vst.msk [vmem:[#allocation2 + $0xa0] sm:$0xff] %vm349_vm0, %v305_v47  ;;  %371 = vst.msk [vmem:[#allocation2 + $0xa8] sm:$0xff] %vm349_vm0, %v306_v48  ;;  %v174_v58 = vmul.f32 %v482_v52, %v647_v1  ;;  %v175_v59 = vmul.f32 %v483_v53, %v647_v1  ;;  %v494_v60 = vunpack.c.l.bf16 %v574_v49  ;;  %v495_v61 = vunpack.c.h.bf16 %v574_v49  ;;  %v579_v48 = vld [vmem:[%s951_s0 + $0xa0] sm:$0xff]   ;;  %v580_v53 = vld [vmem:[%s951_s0 + $0xa8] sm:$0xff]  }
  0x1e   :  { %372 = vst.msk [vmem:[#allocation2 + $0xb0] sm:$0xff] %vm349_vm0, %v307_v50  ;;  %373 = vst.msk [vmem:[#allocation2 + $0xb8] sm:$0xff] %vm349_vm0, %v308_v51  ;;  %v176_v62 = vmul.f32 %v486_v54, %v647_v1  ;;  %v177_v63 = vmul.f32 %v487_v55, %v647_v1  ;;  %v178_v0 = vmul.f32 %v490_v56, %v647_v1  ;;  %v498_v26 = vunpack.c.l.bf16 %v575_v12  ;;  %v581_v54 = vld [vmem:[%s951_s0 + $0xb0] sm:$0xff]  }
  0x1f   :  { %v179_v2 = vmul.f32 %v491_v57, %v647_v1  ;;  %v245_v3 = vadd.f32 %v661_v7, %v174_v58  ;;  %v246_v4 = vadd.f32 %v661_v7, %v175_v59  ;;  %v180_v5 = vmul.f32 %v494_v60, %v647_v1  ;;  %v582_v59 = vld [vmem:[%s951_s0 + $0xb8] sm:$0xff]  }
  0x20   :  { %v181_v6 = vmul.f32 %v495_v61, %v647_v1  ;;  %v247_v8 = vadd.f32 %v661_v7, %v176_v62  ;;  %v248_v9 = vadd.f32 %v661_v7, %v177_v63  ;;  %v249_v10 = vadd.f32 %v661_v7, %v178_v0 }
  0x21   :  { %v250_v11 = vadd.f32 %v661_v7, %v179_v2  ;;  %v309_v13 = vmax.f32 %v245_v3, 0.0  ;;  %v310_v14 = vmax.f32 %v246_v4, 0.0  ;;  %v251_v15 = vadd.f32 %v661_v7, %v180_v5 }
  0x22   :  { %v252_v16 = vadd.f32 %v661_v7, %v181_v6  ;;  %v311_v19 = vmax.f32 %v247_v8, 0.0  ;;  %v312_v20 = vmax.f32 %v248_v9, 0.0  ;;  %v313_v21 = vmax.f32 %v249_v10, 0.0 }
  0x23   :  { %v314_v22 = vmax.f32 %v250_v11, 0.0  ;;  %374 = vst.msk [vmem:[#allocation2 + $0xc0] sm:$0xff] %vm349_vm0, %v309_v13  ;;  %375 = vst.msk [vmem:[#allocation2 + $0xc8] sm:$0xff] %vm349_vm0, %v310_v14  ;;  %v315_v24 = vmax.f32 %v251_v15, 0.0  ;;  %v499_v27 = vunpack.c.h.bf16 %v575_v12  ;;  %v502_v28 = vunpack.c.l.bf16 %v576_v17 }
  0x24   :  { %v316_v25 = vmax.f32 %v252_v16, 0.0  ;;  %376 = vst.msk [vmem:[#allocation2 + $0xd0] sm:$0xff] %vm349_vm0, %v311_v19  ;;  %377 = vst.msk [vmem:[#allocation2 + $0xd8] sm:$0xff] %vm349_vm0, %v312_v20  ;;  %v503_v29 = vunpack.c.h.bf16 %v576_v17  ;;  %v506_v30 = vunpack.c.l.bf16 %v577_v18  ;;  %v507_v31 = vunpack.c.h.bf16 %v577_v18 }
  0x25   :  { %378 = vst.msk [vmem:[#allocation2 + $0xe0] sm:$0xff] %vm349_vm0, %v313_v21  ;;  %379 = vst.msk [vmem:[#allocation2 + $0xe8] sm:$0xff] %vm349_vm0, %v314_v22  ;;  %v182_v32 = vmul.f32 %v498_v26, %v647_v1  ;;  %v183_v33 = vmul.f32 %v499_v27, %v647_v1  ;;  %v510_v34 = vunpack.c.l.bf16 %v578_v23  ;;  %v511_v35 = vunpack.c.h.bf16 %v578_v23  ;;  %v583_v22 = vld [vmem:[%s951_s0 + $0xc0] sm:$0xff]   ;;  %v584_v27 = vld [vmem:[%s951_s0 + $0xc8] sm:$0xff]  }
  0x26   :  { %380 = vst.msk [vmem:[#allocation2 + $0xf0] sm:$0xff] %vm349_vm0, %v315_v24  ;;  %381 = vst.msk [vmem:[#allocation2 + $0xf8] sm:$0xff] %vm349_vm0, %v316_v25  ;;  %v184_v36 = vmul.f32 %v502_v28, %v647_v1  ;;  %v185_v37 = vmul.f32 %v503_v29, %v647_v1  ;;  %v186_v38 = vmul.f32 %v506_v30, %v647_v1  ;;  %v514_v62 = vunpack.c.l.bf16 %v579_v48  ;;  %v585_v28 = vld [vmem:[%s951_s0 + $0xd0] sm:$0xff]  }
  0x27   :  { %v187_v39 = vmul.f32 %v507_v31, %v647_v1  ;;  %v253_v40 = vadd.f32 %v661_v7, %v182_v32  ;;  %v254_v41 = vadd.f32 %v661_v7, %v183_v33  ;;  %v188_v42 = vmul.f32 %v510_v34, %v647_v1  ;;  %v586_v33 = vld [vmem:[%s951_s0 + $0xd8] sm:$0xff]  }
  0x28   :  { %v189_v43 = vmul.f32 %v511_v35, %v647_v1  ;;  %v255_v44 = vadd.f32 %v661_v7, %v184_v36  ;;  %v256_v45 = vadd.f32 %v661_v7, %v185_v37  ;;  %v257_v46 = vadd.f32 %v661_v7, %v186_v38 }
  0x29   :  { %v258_v47 = vadd.f32 %v661_v7, %v187_v39  ;;  %v317_v49 = vmax.f32 %v253_v40, 0.0  ;;  %v318_v50 = vmax.f32 %v254_v41, 0.0  ;;  %v259_v51 = vadd.f32 %v661_v7, %v188_v42 }
  0x2a   :  { %v260_v52 = vadd.f32 %v661_v7, %v189_v43  ;;  %v319_v55 = vmax.f32 %v255_v44, 0.0  ;;  %v320_v56 = vmax.f32 %v256_v45, 0.0  ;;  %v321_v57 = vmax.f32 %v257_v46, 0.0 }
  0x2b   :  { %v322_v58 = vmax.f32 %v258_v47, 0.0  ;;  %382 = vst.msk [vmem:[#allocation2 + $0x100] sm:$0xff] %vm349_vm0, %v317_v49  ;;  %383 = vst.msk [vmem:[#allocation2 + $0x108] sm:$0xff] %vm349_vm0, %v318_v50  ;;  %v323_v60 = vmax.f32 %v259_v51, 0.0  ;;  %v515_v63 = vunpack.c.h.bf16 %v579_v48  ;;  %v518_v0 = vunpack.c.l.bf16 %v580_v53 }
  0x2c   :  { %v324_v61 = vmax.f32 %v260_v52, 0.0  ;;  %384 = vst.msk [vmem:[#allocation2 + $0x110] sm:$0xff] %vm349_vm0, %v319_v55  ;;  %385 = vst.msk [vmem:[#allocation2 + $0x118] sm:$0xff] %vm349_vm0, %v320_v56  ;;  %v519_v2 = vunpack.c.h.bf16 %v580_v53  ;;  %v522_v3 = vunpack.c.l.bf16 %v581_v54  ;;  %v523_v4 = vunpack.c.h.bf16 %v581_v54 }
  0x2d   :  { %386 = vst.msk [vmem:[#allocation2 + $0x120] sm:$0xff] %vm349_vm0, %v321_v57  ;;  %387 = vst.msk [vmem:[#allocation2 + $0x128] sm:$0xff] %vm349_vm0, %v322_v58  ;;  %v190_v5 = vmul.f32 %v514_v62, %v647_v1  ;;  %v191_v6 = vmul.f32 %v515_v63, %v647_v1  ;;  %v526_v8 = vunpack.c.l.bf16 %v582_v59  ;;  %v527_v9 = vunpack.c.h.bf16 %v582_v59  ;;  %v587_v58 = vld [vmem:[%s951_s0 + $0xe0] sm:$0xff]   ;;  %v588_v63 = vld [vmem:[%s951_s0 + $0xe8] sm:$0xff]  }
  0x2e   :  { %388 = vst.msk [vmem:[#allocation2 + $0x130] sm:$0xff] %vm349_vm0, %v323_v60  ;;  %389 = vst.msk [vmem:[#allocation2 + $0x138] sm:$0xff] %vm349_vm0, %v324_v61  ;;  %v192_v10 = vmul.f32 %v518_v0, %v647_v1  ;;  %v193_v11 = vmul.f32 %v519_v2, %v647_v1  ;;  %v194_v12 = vmul.f32 %v522_v3, %v647_v1  ;;  %v530_v36 = vunpack.c.l.bf16 %v583_v22  ;;  %v589_v0 = vld [vmem:[%s951_s0 + $0xf0] sm:$0xff]  }
  0x2f   :  { %v195_v13 = vmul.f32 %v523_v4, %v647_v1  ;;  %v261_v14 = vadd.f32 %v661_v7, %v190_v5  ;;  %v262_v15 = vadd.f32 %v661_v7, %v191_v6  ;;  %v196_v16 = vmul.f32 %v526_v8, %v647_v1  ;;  %v590_v6 = vld [vmem:[%s951_s0 + $0xf8] sm:$0xff]   ;;  %s618_s0 = smov [#allocation2]  }
  0x30   :  { %v197_v17 = vmul.f32 %v527_v9, %v647_v1  ;;  %v263_v18 = vadd.f32 %v661_v7, %v192_v10  ;;  %v264_v19 = vadd.f32 %v661_v7, %v193_v11  ;;  %v265_v20 = vadd.f32 %v661_v7, %v194_v12  ;;  %s419_s22 = sshll.u32 %s618_s0, 4  ;;  %s420_s22 = int_to_ptr.vmem [resolvable:$true] %s419_s22 }
  0x31   :  { %v266_v21 = vadd.f32 %v661_v7, %v195_v13  ;;  %v325_v23 = vmax.f32 %v261_v14, 0.0  ;;  %v326_v24 = vmax.f32 %v262_v15, 0.0  ;;  %v267_v25 = vadd.f32 %v661_v7, %v196_v16  ;;  %s594_s23 = scalar_lea.vmem %s420_s22, 8192  ;;  %p599_p1 = scmp.lt.s32.totalorder %s420_s22, %s420_s22 }
  0x32   :  { %v268_v26 = vadd.f32 %v661_v7, %v197_v17  ;;  %v327_v29 = vmax.f32 %v263_v18, 0.0  ;;  %v328_v30 = vmax.f32 %v264_v19, 0.0  ;;  %v329_v31 = vmax.f32 %v265_v20, 0.0  ;;  %p595_p0 = scmp.ne.s32.totalorder %s420_s22, %s594_s23  ;;  %p600_p2 = scmp.lt.s32.totalorder %s594_s23, %s594_s23 }
  0x33   :  { %v330_v32 = vmax.f32 %v266_v21, 0.0  ;;  %390 = vst.msk [vmem:[#allocation2 + $0x140] sm:$0xff] %vm349_vm0, %v325_v23  ;;  %391 = vst.msk [vmem:[#allocation2 + $0x148] sm:$0xff] %vm349_vm0, %v326_v24  ;;  %v331_v34 = vmax.f32 %v267_v25, 0.0  ;;  %v531_v37 = vunpack.c.h.bf16 %v583_v22  ;;  %v534_v38 = vunpack.c.l.bf16 %v584_v27 }
  0x34   :  { %v332_v35 = vmax.f32 %v268_v26, 0.0  ;;  %392 = vst.msk [vmem:[#allocation2 + $0x150] sm:$0xff] %vm349_vm0, %v327_v29  ;;  %393 = vst.msk [vmem:[#allocation2 + $0x158] sm:$0xff] %vm349_vm0, %v328_v30  ;;  %v535_v39 = vunpack.c.h.bf16 %v584_v27  ;;  %v538_v40 = vunpack.c.l.bf16 %v585_v28  ;;  %v539_v41 = vunpack.c.h.bf16 %v585_v28  ;;  %p601_p3 = por %p600_p2, %p599_p1 }
  0x35   :  { %394 = vst.msk [vmem:[#allocation2 + $0x160] sm:$0xff] %vm349_vm0, %v329_v31  ;;  %395 = vst.msk [vmem:[#allocation2 + $0x168] sm:$0xff] %vm349_vm0, %v330_v32  ;;  %v198_v42 = vmul.f32 %v530_v36, %v647_v1  ;;  %v199_v43 = vmul.f32 %v531_v37, %v647_v1  ;;  %v542_v44 = vunpack.c.l.bf16 %v586_v33  ;;  %v543_v45 = vunpack.c.h.bf16 %v586_v33 }
  0x36   :  { %396 = vst.msk [vmem:[#allocation2 + $0x170] sm:$0xff] %vm349_vm0, %v331_v34  ;;  %397 = vst.msk [vmem:[#allocation2 + $0x178] sm:$0xff] %vm349_vm0, %v332_v35  ;;  %v200_v46 = vmul.f32 %v534_v38, %v647_v1  ;;  %v201_v47 = vmul.f32 %v535_v39, %v647_v1  ;;  %v202_v48 = vmul.f32 %v538_v40, %v647_v1  ;;  %v546_v10 = vunpack.c.l.bf16 %v587_v58  ;;  %p602_p4 = pnand %p601_p3, %p595_p0 }
  0x37   :  { %v203_v49 = vmul.f32 %v539_v41, %v647_v1  ;;  %v269_v50 = vadd.f32 %v661_v7, %v198_v42  ;;  %v270_v51 = vadd.f32 %v661_v7, %v199_v43  ;;  %v204_v52 = vmul.f32 %v542_v44, %v647_v1 }
  0x38   :  { %v205_v53 = vmul.f32 %v543_v45, %v647_v1  ;;  %v271_v54 = vadd.f32 %v661_v7, %v200_v46  ;;  %v272_v55 = vadd.f32 %v661_v7, %v201_v47  ;;  %v273_v56 = vadd.f32 %v661_v7, %v202_v48 }
  0x39   :  { %v274_v57 = vadd.f32 %v661_v7, %v203_v49  ;;  %v333_v59 = vmax.f32 %v269_v50, 0.0  ;;  %v334_v60 = vmax.f32 %v270_v51, 0.0  ;;  %v275_v61 = vadd.f32 %v661_v7, %v204_v52 }
  0x3a   :  { %v276_v62 = vadd.f32 %v661_v7, %v205_v53  ;;  %v335_v2 = vmax.f32 %v271_v54, 0.0  ;;  %v336_v3 = vmax.f32 %v272_v55, 0.0  ;;  %v337_v4 = vmax.f32 %v273_v56, 0.0 }
  0x3b   :  { %v338_v5 = vmax.f32 %v274_v57, 0.0  ;;  %398 = vst.msk [vmem:[#allocation2 + $0x180] sm:$0xff] %vm349_vm0, %v333_v59  ;;  %399 = vst.msk [vmem:[#allocation2 + $0x188] sm:$0xff] %vm349_vm0, %v334_v60  ;;  %v339_v8 = vmax.f32 %v275_v61, 0.0  ;;  %v547_v11 = vunpack.c.h.bf16 %v587_v58  ;;  %v550_v12 = vunpack.c.l.bf16 %v588_v63 }
  0x3c   :  { %v340_v9 = vmax.f32 %v276_v62, 0.0  ;;  %400 = vst.msk [vmem:[#allocation2 + $0x190] sm:$0xff] %vm349_vm0, %v335_v2  ;;  %401 = vst.msk [vmem:[#allocation2 + $0x198] sm:$0xff] %vm349_vm0, %v336_v3  ;;  %v551_v13 = vunpack.c.h.bf16 %v588_v63  ;;  %v554_v14 = vunpack.c.l.bf16 %v589_v0  ;;  %v555_v15 = vunpack.c.h.bf16 %v589_v0 }
  0x3d   :  { %402 = vst.msk [vmem:[#allocation2 + $0x1a0] sm:$0xff] %vm349_vm0, %v337_v4  ;;  %403 = vst.msk [vmem:[#allocation2 + $0x1a8] sm:$0xff] %vm349_vm0, %v338_v5  ;;  %v206_v16 = vmul.f32 %v546_v10, %v647_v1  ;;  %v207_v17 = vmul.f32 %v547_v11, %v647_v1  ;;  %v558_v18 = vunpack.c.l.bf16 %v590_v6  ;;  %v559_v19 = vunpack.c.h.bf16 %v590_v6 }
  0x3e   :  { %404 = vst.msk [vmem:[#allocation2 + $0x1b0] sm:$0xff] %vm349_vm0, %v339_v8  ;;  %405 = vst.msk [vmem:[#allocation2 + $0x1b8] sm:$0xff] %vm349_vm0, %v340_v9  ;;  %v208_v20 = vmul.f32 %v550_v12, %v647_v1  ;;  %v209_v21 = vmul.f32 %v551_v13, %v647_v1  ;;  %v210_v22 = vmul.f32 %v554_v14, %v647_v1 }
  0x3f   :  { %v211_v23 = vmul.f32 %v555_v15, %v647_v1  ;;  %v277_v24 = vadd.f32 %v661_v7, %v206_v16  ;;  %v278_v25 = vadd.f32 %v661_v7, %v207_v17  ;;  %v212_v26 = vmul.f32 %v558_v18, %v647_v1 }
  0x40   :  { %v213_v27 = vmul.f32 %v559_v19, %v647_v1  ;;  %v279_v28 = vadd.f32 %v661_v7, %v208_v20  ;;  %v280_v29 = vadd.f32 %v661_v7, %v209_v21  ;;  %v281_v30 = vadd.f32 %v661_v7, %v210_v22 }
  0x41   :  { %v282_v31 = vadd.f32 %v661_v7, %v211_v23  ;;  %v341_v32 = vmax.f32 %v277_v24, 0.0  ;;  %v342_v33 = vmax.f32 %v278_v25, 0.0  ;;  %v283_v34 = vadd.f32 %v661_v7, %v212_v26 }
  0x42   :  { %v284_v35 = vadd.f32 %v661_v7, %v213_v27  ;;  %v343_v36 = vmax.f32 %v279_v28, 0.0  ;;  %v344_v37 = vmax.f32 %v280_v29, 0.0  ;;  %v345_v38 = vmax.f32 %v281_v30, 0.0 }
  0x43   :  { %v346_v1 = vmax.f32 %v282_v31, 0.0  ;;  %406 = vst.msk [vmem:[#allocation2 + $0x1c0] sm:$0xff] %vm349_vm0, %v341_v32  ;;  %407 = vst.msk [vmem:[#allocation2 + $0x1c8] sm:$0xff] %vm349_vm0, %v342_v33  ;;  %v347_v39 = vmax.f32 %v283_v34, 0.0 }
  0x44   :  { %v348_v40 = vmax.f32 %v284_v35, 0.0  ;;  %408 = vst.msk [vmem:[#allocation2 + $0x1d0] sm:$0xff] %vm349_vm0, %v343_v36  ;;  %409 = vst.msk [vmem:[#allocation2 + $0x1d8] sm:$0xff] %vm349_vm0, %v344_v37 }
  0x45   :  { %410 = vst.msk [vmem:[#allocation2 + $0x1e0] sm:$0xff] %vm349_vm0, %v345_v38  ;;  %411 = vst.msk [vmem:[#allocation2 + $0x1e8] sm:$0xff] %vm349_vm0, %v346_v1 }
  0x46   :  { %412 = vst.msk [vmem:[#allocation2 + $0x1f0] sm:$0xff] %vm349_vm0, %v347_v39  ;;  %413 = vst.msk [vmem:[#allocation2 + $0x1f8] sm:$0xff] %vm349_vm0, %v348_v40 }
  0x47   :  { %605 = shalt.err (!%p602_p4)
}
  0x48   :  { %s606_s24 = scalar_lea.hbm %s954_s3, 8192 }
  0x49   :  { %p607_p5 = scmp.ne.s32.totalorder %s954_s3, %s606_s24  ;;  %p610_p6 = scmp.lt.u32.totalorder %s606_s24, %s954_s3 }
  0x4b   :  { %p612_p7 = pnand %p610_p6, %p607_p5 }
  0x4d   :  { %615 = shalt.err (!%p612_p7)
}
  0x4e   :  { %s619_s29 = smov 128   ;;  %s620_s30 = smov 8  }
  0x4f   :  { %425 = dma.vmem_to_hbm [thread:$0]  %s420_s22, 8192, %s954_s3, [#allocation3], %s619_s29, %s619_s29, %s620_s30  }
  0x50   :  { %616 = dma.done.wait [#allocation3], 8192  }
  0x51   :  { %617 = vsyncadd [#allocation3], 4294959104 }
  0x52   :  { %429 = vsyncpa [#allocation3], 1 }

// kernel: _forward.4
= control target key start
LH: loop header
LB: loop body
LE: loop exit
PB: predicated region body
PF: predicated region fallthrough
CT: control target
= control target key end

     0   :  { %vm14_vm0 = vcmask 1047584   ;;  %v1565_v1 = vmov 0   ;;  %vm143_vm1 = vcmask 31744   ;;  %s2166_s1 = inlined_call_operand.vmem [shape: bf16[128,128], index: 1, kind: input, shape index: {}]   ;;  %s2167_s0 = inlined_call_operand.vmem [shape: f32[512,4], index: 0, kind: input, shape index: {}]   ;;  %s2168_s2 = inlined_call_operand.vmem [shape: bf16[512,128], index: 2, kind: output, shape index: {0}]   ;;  %s2169_s3 = inlined_call_operand.vmem [shape: f32[1,2,128], index: 3, kind: output, shape index: {1}]  }
   0x1   :  { %v1557_v0 = vld [vmem:[%s2166_s1] sm:$0xff]   ;;  %15 = vst.msk [vmem:[#allocation2] sm:$0xff] %vm14_vm0, %v1565_v1  ;;  %16 = vst.msk [vmem:[#allocation2 + $0x8] sm:$0xff] %vm14_vm0, %v1565_v1  ;;  %v1558_v2 = vld [vmem:[%s2166_s1 + $0x8] sm:$0xff]  }
   0x2   :  { %17 = vst.msk [vmem:[#allocation2 + $0x10] sm:$0xff] %vm14_vm0, %v1565_v1  ;;  %18 = vst.msk [vmem:[#allocation2 + $0x18] sm:$0xff] %vm14_vm0, %v1565_v1  ;;  %1460 = vmatprep.subr.bf16.mxu0 %v1557_v0  ;;  %1540 = vmatprep.subr.bf16.mxu1 %v1557_v0  ;;  %v1559_v3 = vld [vmem:[%s2166_s1 + $0x10] sm:$0xff]   ;;  %v1560_v4 = vld [vmem:[%s2166_s1 + $0x18] sm:$0xff]  }
   0x3   :  { %19 = vst.msk [vmem:[#allocation2 + $0x20] sm:$0xff] %vm14_vm0, %v1565_v1  ;;  %20 = vst.msk [vmem:[#allocation2 + $0x28] sm:$0xff] %vm14_vm0, %v1565_v1  ;;  %1461 = vmatpush3.bf16.msra.mxu0 %v1557_v0  ;;  %1548 = vmatpush3.bf16.msra.mxu1 %v1557_v0  ;;  %v47_v5 = vld [vmem:[%s2167_s0] sm:$0xff]  ;;  %v48_v6 = vld [vmem:[%s2167_s0 + $0x8] sm:$0xff] }
   0x4   :  { %21 = vst.msk [vmem:[#allocation2 + $0x30] sm:$0xff] %vm14_vm0, %v1565_v1  ;;  %22 = vst.msk [vmem:[#allocation2 + $0x38] sm:$0xff] %vm14_vm0, %v1565_v1  ;;  %1462 = vmatprep.subr.bf16.mxu0 %v1558_v2  ;;  %1541 = vmatprep.subr.bf16.mxu1 %v1558_v2  ;;  %v49_v7 = vld [vmem:[%s2167_s0 + $0x10] sm:$0xff]  ;;  %v111_v8 = vpack.c.bf16 %v48_v6, %v47_v5  ;;  %v50_v9 = vld [vmem:[%s2167_s0 + $0x18] sm:$0xff] }
   0x5   :  { %23 = vst.msk [vmem:[#allocation2 + $0x40] sm:$0xff] %vm14_vm0, %v1565_v1  ;;  %24 = vst.msk [vmem:[#allocation2 + $0x48] sm:$0xff] %vm14_vm0, %v1565_v1  ;;  %v51_v10 = vld [vmem:[%s2167_s0 + $0x20] sm:$0xff]  ;;  %v52_v11 = vld [vmem:[%s2167_s0 + $0x28] sm:$0xff]  ;;  %v112_v13 = vpack.c.bf16 %v50_v9, %v49_v7 }
   0x6   :  { %25 = vst.msk [vmem:[#allocation2 + $0x50] sm:$0xff] %vm14_vm0, %v1565_v1  ;;  %26 = vst.msk [vmem:[#allocation2 + $0x58] sm:$0xff] %vm14_vm0, %v1565_v1  ;;  %v1651_v12 = vld [vmem:[%s2166_s1 + $0x20] sm:$0xff]   ;;  %v113_v14 = vpack.c.bf16 %v52_v11, %v51_v10  ;;  %v53_v15 = vld [vmem:[%s2167_s0 + $0x30] sm:$0xff] }
   0x7   :  { %27 = vst.msk [vmem:[#allocation2 + $0x60] sm:$0xff] %vm14_vm0, %v1565_v1  ;;  %28 = vst.msk [vmem:[#allocation2 + $0x68] sm:$0xff] %vm14_vm0, %v1565_v1  ;;  %1463 = vmatpush3.bf16.msra.mxu0 %v1558_v2  ;;  %1549 = vmatpush3.bf16.msra.mxu1 %v1558_v2  ;;  %v54_v16 = vld [vmem:[%s2167_s0 + $0x38] sm:$0xff]  ;;  %v55_v17 = vld [vmem:[%s2167_s0 + $0x40] sm:$0xff] }
   0x8   :  { %29 = vst.msk [vmem:[#allocation2 + $0x70] sm:$0xff] %vm14_vm0, %v1565_v1  ;;  %30 = vst.msk [vmem:[#allocation2 + $0x78] sm:$0xff] %vm14_vm0, %v1565_v1  ;;  %1464 = vmatprep.subr.bf16.mxu0 %v1559_v3  ;;  %1542 = vmatprep.subr.bf16.mxu1 %v1559_v3  ;;  %v114_v18 = vpack.c.bf16 %v54_v16, %v53_v15  ;;  %v56_v19 = vld [vmem:[%s2167_s0 + $0x48] sm:$0xff]  ;;  %v57_v20 = vld [vmem:[%s2167_s0 + $0x50] sm:$0xff] }
   0x9   :  { %31 = vst.msk [vmem:[#allocation2 + $0x80] sm:$0xff] %vm14_vm0, %v1565_v1  ;;  %32 = vst.msk [vmem:[#allocation2 + $0x88] sm:$0xff] %vm14_vm0, %v1565_v1  ;;  %v58_v21 = vld [vmem:[%s2167_s0 + $0x58] sm:$0xff]  ;;  %v115_v22 = vpack.c.bf16 %v56_v19, %v55_v17  ;;  %v59_v24 = vld [vmem:[%s2167_s0 + $0x60] sm:$0xff] }
   0xa   :  { %33 = vst.msk [vmem:[#allocation2 + $0x90] sm:$0xff] %vm14_vm0, %v1565_v1  ;;  %34 = vst.msk [vmem:[#allocation2 + $0x98] sm:$0xff] %vm14_vm0, %v1565_v1  ;;  %v116_v23 = vpack.c.bf16 %v58_v21, %v57_v20  ;;  %v60_v25 = vld [vmem:[%s2167_s0 + $0x68] sm:$0xff]  ;;  %v61_v26 = vld [vmem:[%s2167_s0 + $0x70] sm:$0xff] }
   0xb   :  { %35 = vst.msk [vmem:[#allocation2 + $0xa0] sm:$0xff] %vm14_vm0, %v1565_v1  ;;  %36 = vst.msk [vmem:[#allocation2 + $0xa8] sm:$0xff] %vm14_vm0, %v1565_v1  ;;  %1465 = vmatpush3.bf16.msra.mxu0 %v1559_v3  ;;  %1550 = vmatpush3.bf16.msra.mxu1 %v1559_v3  ;;  %v117_v27 = vpack.c.bf16 %v60_v25, %v59_v24  ;;  %v62_v28 = vld [vmem:[%s2167_s0 + $0x78] sm:$0xff]  ;;  %v63_v29 = vld [vmem:[%s2167_s0 + $0x80] sm:$0xff] }
   0xc   :  { %37 = vst.msk [vmem:[#allocation2 + $0xb0] sm:$0xff] %vm14_vm0, %v1565_v1  ;;  %38 = vst.msk [vmem:[#allocation2 + $0xb8] sm:$0xff] %vm14_vm0, %v1565_v1  ;;  %1466 = vmatprep.subr.bf16.mxu0 %v1560_v4  ;;  %1543 = vmatprep.subr.bf16.mxu1 %v1560_v4  ;;  %v64_v30 = vld [vmem:[%s2167_s0 + $0x88] sm:$0xff]  ;;  %v118_v32 = vpack.c.bf16 %v62_v28, %v61_v26  ;;  %v65_v34 = vld [vmem:[%s2167_s0 + $0x90] sm:$0xff] }
   0xd   :  { %39 = vst.msk [vmem:[#allocation2 + $0xc0] sm:$0xff] %vm14_vm0, %v1565_v1  ;;  %40 = vst.msk [vmem:[#allocation2 + $0xc8] sm:$0xff] %vm14_vm0, %v1565_v1  ;;  %v1562_v31 = vld [vmem:[%s2166_s1 + $0x28] sm:$0xff]   ;;  %v119_v33 = vpack.c.bf16 %v64_v30, %v63_v29  ;;  %v66_v35 = vld [vmem:[%s2167_s0 + $0x98] sm:$0xff] }
   0xe   :  { %41 = vst.msk [vmem:[#allocation2 + $0xd0] sm:$0xff] %vm14_vm0, %v1565_v1  ;;  %42 = vst.msk [vmem:[#allocation2 + $0xd8] sm:$0xff] %vm14_vm0, %v1565_v1  ;;  %v67_v36 = vld [vmem:[%s2167_s0 + $0xa0] sm:$0xff]  ;;  %v120_v37 = vpack.c.bf16 %v66_v35, %v65_v34  ;;  %v68_v38 = vld [vmem:[%s2167_s0 + $0xa8] sm:$0xff] }
   0xf   :  { %43 = vst.msk [vmem:[#allocation2 + $0xe0] sm:$0xff] %vm14_vm0, %v1565_v1  ;;  %44 = vst.msk [vmem:[#allocation2 + $0xe8] sm:$0xff] %vm14_vm0, %v1565_v1  ;;  %1467 = vmatpush3.bf16.msra.mxu0 %v1560_v4  ;;  %v69_v39 = vld [vmem:[%s2167_s0 + $0xb0] sm:$0xff]  ;;  %v70_v40 = vld [vmem:[%s2167_s0 + $0xb8] sm:$0xff]  ;;  %1551 = vmatpush3.bf16.msra.mxu1 %v1560_v4  ;;  %v121_v41 = vpack.c.bf16 %v68_v38, %v67_v36 }
  0x10   :  { %45 = vst.msk [vmem:[#allocation2 + $0xf0] sm:$0xff] %vm14_vm0, %v1565_v1  ;;  %46 = vst.msk [vmem:[#allocation2 + $0xf8] sm:$0xff] %vm14_vm0, %v1565_v1  ;;  %1468 = vmatprep.subr.bf16.mxu0 %v1651_v12  ;;  %v122_v42 = vpack.c.bf16 %v70_v40, %v69_v39  ;;  %1544 = vmatprep.subr.bf16.mxu1 %v1651_v12  ;;  %v71_v43 = vld [vmem:[%s2167_s0 + $0xc0] sm:$0xff]  ;;  %v72_v44 = vld [vmem:[%s2167_s0 + $0xc8] sm:$0xff] }
  0x11   :  { %144 = vst.msk [vmem:[#allocation2] sm:$0xff] %vm143_vm1, %v111_v8  ;;  %145 = vst.msk [vmem:[#allocation2 + $0x8] sm:$0xff] %vm143_vm1, %v112_v13  ;;  %v73_v45 = vld [vmem:[%s2167_s0 + $0xd0] sm:$0xff]  ;;  %v123_v46 = vpack.c.bf16 %v72_v44, %v71_v43  ;;  %v74_v47 = vld [vmem:[%s2167_s0 + $0xd8] sm:$0xff] }
  0x12   :  { %146 = vst.msk [vmem:[#allocation2 + $0x10] sm:$0xff] %vm143_vm1, %v113_v14  ;;  %147 = vst.msk [vmem:[#allocation2 + $0x18] sm:$0xff] %vm143_vm1, %v114_v18  ;;  %v75_v48 = vld [vmem:[%s2167_s0 + $0xe0] sm:$0xff]  ;;  %v76_v49 = vld [vmem:[%s2167_s0 + $0xe8] sm:$0xff]  ;;  %v124_v51 = vpack.c.bf16 %v74_v47, %v73_v45 }
  0x13   :  { %148 = vst.msk [vmem:[#allocation2 + $0x20] sm:$0xff] %vm143_vm1, %v115_v22  ;;  %149 = vst.msk [vmem:[#allocation2 + $0x28] sm:$0xff] %vm143_vm1, %v116_v23  ;;  %v125_v52 = vpack.c.bf16 %v76_v49, %v75_v48  ;;  %v77_v53 = vld [vmem:[%s2167_s0 + $0xf0] sm:$0xff]  ;;  %v78_v54 = vld [vmem:[%s2167_s0 + $0xf8] sm:$0xff]  ;;  %1469 = vmatpush3.bf16.msra.mxu0 %v1651_v12  ;;  %1552 = vmatpush3.bf16.msra.mxu1 %v1651_v12 }
  0x14   :  { %150 = vst.msk [vmem:[#allocation2 + $0x30] sm:$0xff] %vm143_vm1, %v117_v27  ;;  %151 = vst.msk [vmem:[#allocation2 + $0x38] sm:$0xff] %vm143_vm1, %v118_v32  ;;  %v126_v55 = vpack.c.bf16 %v78_v54, %v77_v53  ;;  %v79_v56 = vld [vmem:[%s2167_s0 + $0x100] sm:$0xff]  ;;  %1470 = vmatprep.subr.bf16.mxu0 %v1562_v31  ;;  %v1563_v57 = vld [vmem:[%s2166_s1 + $0x30] sm:$0xff]   ;;  %1545 = vmatprep.subr.bf16.mxu1 %v1562_v31 }
  0x15   :  { %152 = vst.msk [vmem:[#allocation2 + $0x40] sm:$0xff] %vm143_vm1, %v119_v33  ;;  %153 = vst.msk [vmem:[#allocation2 + $0x48] sm:$0xff] %vm143_vm1, %v120_v37  ;;  %v80_v58 = vld [vmem:[%s2167_s0 + $0x108] sm:$0xff]  ;;  %v81_v59 = vld [vmem:[%s2167_s0 + $0x110] sm:$0xff] }
  0x16   :  { %154 = vst.msk [vmem:[#allocation2 + $0x50] sm:$0xff] %vm143_vm1, %v121_v41  ;;  %155 = vst.msk [vmem:[#allocation2 + $0x58] sm:$0xff] %vm143_vm1, %v122_v42  ;;  %v127_v60 = vpack.c.bf16 %v80_v58, %v79_v56  ;;  %v82_v61 = vld [vmem:[%s2167_s0 + $0x118] sm:$0xff]  ;;  %v83_v63 = vld [vmem:[%s2167_s0 + $0x120] sm:$0xff] }
  0x17   :  { %156 = vst.msk [vmem:[#allocation2 + $0x60] sm:$0xff] %vm143_vm1, %v123_v46  ;;  %157 = vst.msk [vmem:[#allocation2 + $0x68] sm:$0xff] %vm143_vm1, %v124_v51  ;;  %v128_v62 = vpack.c.bf16 %v82_v61, %v81_v59  ;;  %v84_v0 = vld [vmem:[%s2167_s0 + $0x128] sm:$0xff]  ;;  %1471 = vmatpush3.bf16.msra.mxu0 %v1562_v31  ;;  %v85_v2 = vld [vmem:[%s2167_s0 + $0x130] sm:$0xff]  ;;  %1553 = vmatpush3.bf16.msra.mxu1 %v1562_v31 }
  0x18   :  { %v176_v50 = vld [vmem:[#allocation2] sm:$0xff]  ;;  %158 = vst.msk [vmem:[#allocation2 + $0x70] sm:$0xff] %vm143_vm1, %v125_v52  ;;  %159 = vst.msk [vmem:[#allocation2 + $0x78] sm:$0xff] %vm143_vm1, %v126_v55  ;;  %v129_v1 = vpack.c.bf16 %v84_v0, %v83_v63  ;;  %1472 = vmatprep.subr.bf16.mxu0 %v1563_v57  ;;  %v1564_v3 = vld [vmem:[%s2166_s1 + $0x38] sm:$0xff]   ;;  %1546 = vmatprep.subr.bf16.mxu1 %v1563_v57 }
  0x19   :  { %1476 = vmatprep.mubr.bf16.mxu0 %v176_v50  ;;  %160 = vst.msk [vmem:[#allocation2 + $0x80] sm:$0xff] %vm143_vm1, %v127_v60  ;;  %161 = vst.msk [vmem:[#allocation2 + $0x88] sm:$0xff] %vm143_vm1, %v128_v62  ;;  %v86_v4 = vld [vmem:[%s2167_s0 + $0x138] sm:$0xff]  ;;  %v87_v5 = vld [vmem:[%s2167_s0 + $0x140] sm:$0xff] }
  0x1a   :  { %162 = vst.msk [vmem:[#allocation2 + $0x90] sm:$0xff] %vm143_vm1, %v129_v1  ;;  %v130_v6 = vpack.c.bf16 %v86_v4, %v85_v2  ;;  %v88_v7 = vld [vmem:[%s2167_s0 + $0x148] sm:$0xff]  ;;  %v89_v9 = vld [vmem:[%s2167_s0 + $0x150] sm:$0xff]  ;;  %v90_v10 = vld [vmem:[%s2167_s0 + $0x158] sm:$0xff] }
  0x1b   :  { %v131_v8 = vpack.c.bf16 %v88_v7, %v87_v5  ;;  %1473 = vmatpush3.bf16.msra.mxu0 %v1563_v57  ;;  %v132_v11 = vpack.c.bf16 %v90_v10, %v89_v9  ;;  %v91_v12 = vld [vmem:[%s2167_s0 + $0x160] sm:$0xff]  ;;  %1554 = vmatpush3.bf16.msra.mxu1 %v1563_v57  ;;  %v92_v13 = vld [vmem:[%s2167_s0 + $0x168] sm:$0xff]  ;;  %v93_v14 = vld [vmem:[%s2167_s0 + $0x170] sm:$0xff] }
  0x1c   :  { %163 = vst.msk [vmem:[#allocation2 + $0x98] sm:$0xff] %vm143_vm1, %v130_v6  ;;  %1474 = vmatprep.subr.bf16.mxu0 %v1564_v3  ;;  %v177_v15 = vld [vmem:[#allocation2 + $0x8] sm:$0xff]  ;;  %1547 = vmatprep.subr.bf16.mxu1 %v1564_v3  ;;  %v133_v16 = vpack.c.bf16 %v92_v13, %v91_v12  ;;  %v94_v17 = vld [vmem:[%s2167_s0 + $0x178] sm:$0xff]  ;;  %v95_v18 = vld [vmem:[%s2167_s0 + $0x180] sm:$0xff] }
  0x1d   :  { %164 = vst.msk [vmem:[#allocation2 + $0xa0] sm:$0xff] %vm143_vm1, %v131_v8  ;;  %165 = vst.msk [vmem:[#allocation2 + $0xa8] sm:$0xff] %vm143_vm1, %v132_v11  ;;  %v96_v19 = vld [vmem:[%s2167_s0 + $0x188] sm:$0xff]  ;;  %v178_v20 = vld [vmem:[#allocation2 + $0x10] sm:$0xff]  ;;  %v134_v22 = vpack.c.bf16 %v94_v17, %v93_v14 }
  0x1e   :  { %v135_v23 = vpack.c.bf16 %v96_v19, %v95_v18  ;;  %v97_v24 = vld [vmem:[%s2167_s0 + $0x190] sm:$0xff]  ;;  %v98_v25 = vld [vmem:[%s2167_s0 + $0x198] sm:$0xff]  ;;  %166 = vst.msk [vmem:[#allocation2 + $0xb0] sm:$0xff] %vm143_vm1, %v133_v16  ;;  %v99_v28 = vld [vmem:[%s2167_s0 + $0x1a0] sm:$0xff] }
  0x1f   :  { %1475 = vmatpush3.bf16.msra.mxu0 %v1564_v3  ;;  %v136_v27 = vpack.c.bf16 %v98_v25, %v97_v24  ;;  %v100_v29 = vld [vmem:[%s2167_s0 + $0x1a8] sm:$0xff]  ;;  %1555 = vmatpush3.bf16.msra.mxu1 %v1564_v3  ;;  %167 = vst.msk [vmem:[#allocation2 + $0xb8] sm:$0xff] %vm143_vm1, %v134_v22  ;;  %v101_v32 = vld [vmem:[%s2167_s0 + $0x1b0] sm:$0xff]  ;;  %v102_v33 = vld [vmem:[%s2167_s0 + $0x1b8] sm:$0xff] }
  0x20   :  { %v192_v21 = vld [vmem:[#allocation2 + $0x80] sm:$0xff]  ;;  %v193_v26 = vld [vmem:[#allocation2 + $0x88] sm:$0xff]  ;;  %168 = vst.msk [vmem:[#allocation2 + $0xc0] sm:$0xff] %vm143_vm1, %v135_v23  ;;  %v137_v31 = vpack.c.bf16 %v100_v29, %v99_v28  ;;  %v138_v34 = vpack.c.bf16 %v102_v33, %v101_v32  ;;  %v105_v37 = vld [vmem:[%s2167_s0 + $0x1d0] sm:$0xff] }
  0x21   :  { %1508 = vmatprep.mubr.bf16.mxu1 %v192_v21  ;;  %v194_v30 = vld [vmem:[#allocation2 + $0x90] sm:$0xff]  ;;  %169 = vst.msk [vmem:[#allocation2 + $0xc8] sm:$0xff] %vm143_vm1, %v136_v27  ;;  %v103_v35 = vld [vmem:[%s2167_s0 + $0x1c0] sm:$0xff]  ;;  %v104_v36 = vld [vmem:[%s2167_s0 + $0x1c8] sm:$0xff] }
  0x22   :  { %1477 = vmatmul.mubr.bf16.vlgmr.msra.gmra.mrb[0].mxu0 %v177_v15  ;;  %170 = vst.msk [vmem:[#allocation2 + $0xd0] sm:$0xff] %vm143_vm1, %v137_v31  ;;  %v139_v38 = vpack.c.bf16 %v104_v36, %v103_v35  ;;  %v106_v39 = vld [vmem:[%s2167_s0 + $0x1d8] sm:$0xff]  ;;  %v107_v40 = vld [vmem:[%s2167_s0 + $0x1e0] sm:$0xff]  ;;  %1509 = vmatmul.mubr.bf16.vlgmr.msra.gmra.mrb[0].mxu1 %v193_v26  ;;  %171 = vst.msk [vmem:[#allocation2 + $0xd8] sm:$0xff] %vm143_vm1, %v138_v34 }
  0x23   :  { %1480 = vmatprep.mubr.bf16.mxu0 %v178_v20  ;;  %v140_v41 = vpack.c.bf16 %v106_v39, %v105_v37  ;;  %v108_v42 = vld [vmem:[%s2167_s0 + $0x1e8] sm:$0xff]  ;;  %v109_v43 = vld [vmem:[%s2167_s0 + $0x1f0] sm:$0xff]  ;;  %1512 = vmatprep.mubr.bf16.mxu1 %v194_v30  ;;  %v110_v45 = vld [vmem:[%s2167_s0 + $0x1f8] sm:$0xff] }
  0x24   :  { %172 = vst.msk [vmem:[#allocation2 + $0xe0] sm:$0xff] %vm143_vm1, %v139_v38  ;;  %v141_v44 = vpack.c.bf16 %v108_v42, %v107_v40  ;;  %v142_v46 = vpack.c.bf16 %v110_v45, %v109_v43  ;;  %v179_v47 = vld [vmem:[#allocation2 + $0x18] sm:$0xff]  ;;  %v180_v48 = vld [vmem:[#allocation2 + $0x20] sm:$0xff]  ;;  %v181_v51 = vld [vmem:[#allocation2 + $0x28] sm:$0xff] }
  0x25   :  { %173 = vst.msk [vmem:[#allocation2 + $0xe8] sm:$0xff] %vm143_vm1, %v140_v41  ;;  %v195_v49 = vld [vmem:[#allocation2 + $0x98] sm:$0xff]  ;;  %v196_v50 = vld [vmem:[#allocation2 + $0xa0] sm:$0xff]  ;;  %v182_v52 = vld [vmem:[#allocation2 + $0x30] sm:$0xff] }
  0x26   :  { %174 = vst.msk [vmem:[#allocation2 + $0xf0] sm:$0xff] %vm143_vm1, %v141_v44  ;;  %175 = vst.msk [vmem:[#allocation2 + $0xf8] sm:$0xff] %vm143_vm1, %v142_v46  ;;  %v197_v53 = vld [vmem:[#allocation2 + $0xa8] sm:$0xff]  ;;  %v198_v54 = vld [vmem:[#allocation2 + $0xb0] sm:$0xff] }
  0x27   :  { %v183_v55 = vld [vmem:[#allocation2 + $0x38] sm:$0xff]  ;;  %v184_v56 = vld [vmem:[#allocation2 + $0x40] sm:$0xff]  ;;  %v185_v59 = vld [vmem:[#allocation2 + $0x48] sm:$0xff] }
  0x28   :  { %v199_v57 = vld [vmem:[#allocation2 + $0xb8] sm:$0xff]  ;;  %v200_v58 = vld [vmem:[#allocation2 + $0xc0] sm:$0xff]  ;;  %v186_v60 = vld [vmem:[#allocation2 + $0x50] sm:$0xff] }
  0x29   :  { %v201_v61 = vld [vmem:[#allocation2 + $0xc8] sm:$0xff]  ;;  %v202_v62 = vld [vmem:[#allocation2 + $0xd0] sm:$0xff]  ;;  %v187_v63 = vld [vmem:[#allocation2 + $0x58] sm:$0xff] }
  0x2a   :  { %1481 = vmatmul.mubr.bf16.gmra.mrb[4].mxu0 %v179_v47  ;;  %1513 = vmatmul.mubr.bf16.gmra.mrb[4].mxu1 %v195_v49  ;;  %v188_v0 = vld [vmem:[#allocation2 + $0x60] sm:$0xff]  ;;  %v203_v1 = vld [vmem:[#allocation2 + $0xd8] sm:$0xff]  ;;  %v189_v3 = vld [vmem:[#allocation2 + $0x68] sm:$0xff] }
  0x2b   :  { %1484 = vmatprep.mubr.bf16.mxu0 %v180_v48  ;;  %1516 = vmatprep.mubr.bf16.mxu1 %v196_v50  ;;  %v204_v2 = vld [vmem:[#allocation2 + $0xe0] sm:$0xff]  ;;  %v190_v4 = vld [vmem:[#allocation2 + $0x70] sm:$0xff]  ;;  %v191_v7 = vld [vmem:[#allocation2 + $0x78] sm:$0xff] }
  0x2c   :  { %v205_v5 = vld [vmem:[#allocation2 + $0xe8] sm:$0xff] }
  0x2d   :  { %v206_v6 = vld [vmem:[#allocation2 + $0xf0] sm:$0xff]  ;;  %v207_v8 = vld [vmem:[#allocation2 + $0xf8] sm:$0xff] }
  0x32   :  { %1485 = vmatmul.mubr.bf16.gmra.mrb[8].mxu0 %v181_v51  ;;  %1517 = vmatmul.mubr.bf16.gmra.mrb[8].mxu1 %v197_v53 }
  0x33   :  { %1488 = vmatprep.mubr.bf16.mxu0 %v182_v52  ;;  %1520 = vmatprep.mubr.bf16.mxu1 %v198_v54 }
  0x3a   :  { %1489 = vmatmul.mubr.bf16.gmra.mrb[12].mxu0 %v183_v55  ;;  %1521 = vmatmul.mubr.bf16.gmra.mrb[12].mxu1 %v199_v57 }
  0x3b   :  { %1492 = vmatprep.mubr.bf16.mxu0 %v184_v56  ;;  %1524 = vmatprep.mubr.bf16.mxu1 %v200_v58 }
  0x42   :  { %1493 = vmatmul.mubr.bf16.gmra.mrb[16].mxu0 %v185_v59  ;;  %1525 = vmatmul.mubr.bf16.gmra.mrb[16].mxu1 %v201_v61 }
  0x43   :  { %1496 = vmatprep.mubr.bf16.mxu0 %v186_v60  ;;  %1528 = vmatprep.mubr.bf16.mxu1 %v202_v62 }
  0x4a   :  { %1497 = vmatmul.mubr.bf16.gmra.mrb[20].mxu0 %v187_v63  ;;  %1529 = vmatmul.mubr.bf16.gmra.mrb[20].mxu1 %v203_v1 }
  0x4b   :  { %1500 = vmatprep.mubr.bf16.mxu0 %v188_v0  ;;  %1532 = vmatprep.mubr.bf16.mxu1 %v204_v2 }
  0x52   :  { %1501 = vmatmul.mubr.bf16.gmra.mrb[24].mxu0 %v189_v3  ;;  %1533 = vmatmul.mubr.bf16.gmra.mrb[24].mxu1 %v205_v5 }
  0x53   :  { %1504 = vmatprep.mubr.bf16.mxu0 %v190_v4  ;;  %1536 = vmatprep.mubr.bf16.mxu1 %v206_v6 }
  0x5a   :  { %1505 = vmatmul.mubr.bf16.gmra.mrb[28].mxu0 %v191_v7  ;;  %1537 = vmatmul.mubr.bf16.gmra.mrb[28].mxu1 %v207_v8 }
  0xf5   :  { %v1478_v9 = vpop.f32.mrb[0].mxu0  ;;  %v1872_v11 = vpop.f32.mrb[0].mxu1 }
  0xf6   :  { %v306_v10 = vpop.f32.mrb[1].mxu0  ;;  %v1874_v13 = vpop.f32.mrb[1].mxu1  ;;  %v633_v24 = vmul.f32 %v1478_v9, %v1478_v9 }
  0xf7   :  { %v1479_v12 = vpop.f32.mrb[2].mxu0  ;;  %v1876_v16 = vpop.f32.mrb[2].mxu1  ;;  %v631_v17 = vmul.f32 %v306_v10, %v306_v10 }
  0xf8   :  { %v1237_v14 = vpack.c.bf16 %v1479_v12, %v1478_v9  ;;  %v309_v15 = vpop.f32.mrb[3].mxu0  ;;  %v1878_v21 = vpop.f32.mrb[3].mxu1  ;;  %v1317_v22 = vpack.c.bf16 %v1876_v16, %v1872_v11  ;;  %v634_v27 = vmul.f32 %v1479_v12, %v1479_v12 }
  0xf9   :  { %v561_v18 = vadd.f32 %v309_v15, %v306_v10  ;;  %v632_v19 = vmul.f32 %v309_v15, %v309_v15  ;;  %v1232_v20 = vpack.c.bf16 %v309_v15, %v306_v10  ;;  %v1312_v23 = vpack.c.bf16 %v1878_v21, %v1874_v13 }
  0xfa   :  { %1389 = vst [vmem:[%s2168_s2 + $0x8] sm:$0xff] %v1237_v14   ;;  %1405 = vst [vmem:[%s2168_s2 + $0x88] sm:$0xff] %v1317_v22  }
  0xfb   :  { %v562_v25 = vadd.f32 %v1478_v9, %v561_v18  ;;  %v695_v26 = vadd.f32 %v632_v19, %v631_v17  ;;  %1233 = vst [vmem:[%s2168_s2] sm:$0xff] %v1232_v20   ;;  %1404 = vst [vmem:[%s2168_s2 + $0x80] sm:$0xff] %v1312_v23  }
  0xfd   :  { %v696_v28 = vadd.f32 %v695_v26, %v633_v24  ;;  %v1482_v29 = vpop.f32.mrb[4].mxu0  ;;  %v563_v30 = vadd.f32 %v1479_v12, %v562_v25  ;;  %v1896_v32 = vpop.f32.mrb[4].mxu1 }
  0xfe   :  { %v322_v31 = vpop.f32.mrb[5].mxu0  ;;  %v1898_v37 = vpop.f32.mrb[5].mxu1  ;;  %v637_v48 = vmul.f32 %v1482_v29, %v1482_v29 }
  0xff   :  { %v564_v33 = vadd.f32 %v563_v30, %v322_v31  ;;  %v635_v34 = vmul.f32 %v322_v31, %v322_v31  ;;  %v697_v35 = vadd.f32 %v696_v28, %v634_v27  ;;  %v1483_v36 = vpop.f32.mrb[6].mxu0  ;;  %v1900_v40 = vpop.f32.mrb[6].mxu1 }
 0x100   :  { %v1247_v38 = vpack.c.bf16 %v1483_v36, %v1482_v29  ;;  %v325_v39 = vpop.f32.mrb[7].mxu0  ;;  %v1902_v45 = vpop.f32.mrb[7].mxu1  ;;  %v1327_v46 = vpack.c.bf16 %v1900_v40, %v1896_v32  ;;  %v638_v51 = vmul.f32 %v1483_v36, %v1483_v36 }
 0x101   :  { %v698_v41 = vadd.f32 %v697_v35, %v635_v34  ;;  %v565_v42 = vadd.f32 %v564_v33, %v325_v39  ;;  %v636_v43 = vmul.f32 %v325_v39, %v325_v39  ;;  %v1242_v44 = vpack.c.bf16 %v325_v39, %v322_v31 }
 0x102   :  { %1391 = vst [vmem:[%s2168_s2 + $0x18] sm:$0xff] %v1247_v38   ;;  %v1322_v47 = vpack.c.bf16 %v1902_v45, %v1898_v37  ;;  %1407 = vst [vmem:[%s2168_s2 + $0x98] sm:$0xff] %v1327_v46  }
 0x103   :  { %v566_v49 = vadd.f32 %v1482_v29, %v565_v42  ;;  %v699_v50 = vadd.f32 %v698_v41, %v636_v43  ;;  %1390 = vst [vmem:[%s2168_s2 + $0x10] sm:$0xff] %v1242_v44  }
 0x104   :  { %1406 = vst [vmem:[%s2168_s2 + $0x90] sm:$0xff] %v1322_v47  }
 0x105   :  { %v700_v52 = vadd.f32 %v699_v50, %v637_v48  ;;  %v1486_v53 = vpop.f32.mrb[8].mxu0  ;;  %v567_v54 = vadd.f32 %v1483_v36, %v566_v49  ;;  %v1920_v56 = vpop.f32.mrb[8].mxu1 }
 0x106   :  { %v338_v55 = vpop.f32.mrb[9].mxu0  ;;  %v1922_v61 = vpop.f32.mrb[9].mxu1  ;;  %v641_v8 = vmul.f32 %v1486_v53, %v1486_v53 }
 0x107   :  { %v568_v57 = vadd.f32 %v567_v54, %v338_v55  ;;  %v639_v58 = vmul.f32 %v338_v55, %v338_v55  ;;  %v701_v59 = vadd.f32 %v700_v52, %v638_v51  ;;  %v1487_v60 = vpop.f32.mrb[10].mxu0  ;;  %v1924_v0 = vpop.f32.mrb[10].mxu1 }
 0x108   :  { %v1257_v62 = vpack.c.bf16 %v1487_v60, %v1486_v53  ;;  %v341_v63 = vpop.f32.mrb[11].mxu0  ;;  %v1926_v5 = vpop.f32.mrb[11].mxu1  ;;  %v1337_v6 = vpack.c.bf16 %v1924_v0, %v1920_v56  ;;  %v642_v12 = vmul.f32 %v1487_v60, %v1487_v60 }
 0x109   :  { %v702_v1 = vadd.f32 %v701_v59, %v639_v58  ;;  %v569_v2 = vadd.f32 %v568_v57, %v341_v63  ;;  %v640_v3 = vmul.f32 %v341_v63, %v341_v63  ;;  %v1252_v4 = vpack.c.bf16 %v341_v63, %v338_v55 }
 0x10a   :  { %1393 = vst [vmem:[%s2168_s2 + $0x28] sm:$0xff] %v1257_v62   ;;  %v1332_v7 = vpack.c.bf16 %v1926_v5, %v1922_v61  ;;  %1409 = vst [vmem:[%s2168_s2 + $0xa8] sm:$0xff] %v1337_v6  }
 0x10b   :  { %v570_v9 = vadd.f32 %v1486_v53, %v569_v2  ;;  %v703_v10 = vadd.f32 %v702_v1, %v640_v3  ;;  %1392 = vst [vmem:[%s2168_s2 + $0x20] sm:$0xff] %v1252_v4  }
 0x10c   :  { %1408 = vst [vmem:[%s2168_s2 + $0xa0] sm:$0xff] %v1332_v7  }
 0x10d   :  { %v704_v14 = vadd.f32 %v703_v10, %v641_v8  ;;  %v1490_v15 = vpop.f32.mrb[12].mxu0  ;;  %v571_v17 = vadd.f32 %v1487_v60, %v570_v9  ;;  %v1944_v19 = vpop.f32.mrb[12].mxu1 }
 0x10e   :  { %v354_v18 = vpop.f32.mrb[13].mxu0  ;;  %v1946_v25 = vpop.f32.mrb[13].mxu1  ;;  %v645_v38 = vmul.f32 %v1490_v15, %v1490_v15 }
 0x10f   :  { %v572_v20 = vadd.f32 %v571_v17, %v354_v18  ;;  %v643_v22 = vmul.f32 %v354_v18, %v354_v18  ;;  %v705_v23 = vadd.f32 %v704_v14, %v642_v12  ;;  %v1491_v24 = vpop.f32.mrb[14].mxu0  ;;  %v1948_v28 = vpop.f32.mrb[14].mxu1 }
 0x110   :  { %v1267_v26 = vpack.c.bf16 %v1491_v24, %v1490_v15  ;;  %v357_v27 = vpop.f32.mrb[15].mxu0  ;;  %v1950_v34 = vpop.f32.mrb[15].mxu1  ;;  %v1347_v35 = vpack.c.bf16 %v1948_v28, %v1944_v19  ;;  %v646_v42 = vmul.f32 %v1491_v24, %v1491_v24 }
 0x111   :  { %v706_v29 = vadd.f32 %v705_v23, %v643_v22  ;;  %v573_v30 = vadd.f32 %v572_v20, %v357_v27  ;;  %v644_v31 = vmul.f32 %v357_v27, %v357_v27  ;;  %v1262_v33 = vpack.c.bf16 %v357_v27, %v354_v18 }
 0x112   :  { %1395 = vst [vmem:[%s2168_s2 + $0x38] sm:$0xff] %v1267_v26   ;;  %v1342_v36 = vpack.c.bf16 %v1950_v34, %v1946_v25  ;;  %1411 = vst [vmem:[%s2168_s2 + $0xb8] sm:$0xff] %v1347_v35  }
 0x113   :  { %v574_v39 = vadd.f32 %v1490_v15, %v573_v30  ;;  %v707_v41 = vadd.f32 %v706_v29, %v644_v31  ;;  %1394 = vst [vmem:[%s2168_s2 + $0x30] sm:$0xff] %v1262_v33  }
 0x114   :  { %1410 = vst [vmem:[%s2168_s2 + $0xb0] sm:$0xff] %v1342_v36  }
 0x115   :  { %v708_v43 = vadd.f32 %v707_v41, %v645_v38  ;;  %v1494_v44 = vpop.f32.mrb[16].mxu0  ;;  %v575_v46 = vadd.f32 %v1491_v24, %v574_v39  ;;  %v1968_v48 = vpop.f32.mrb[16].mxu1 }
 0x116   :  { %v370_v47 = vpop.f32.mrb[17].mxu0  ;;  %v1970_v53 = vpop.f32.mrb[17].mxu1  ;;  %v649_v3 = vmul.f32 %v1494_v44, %v1494_v44 }
 0x117   :  { %v576_v49 = vadd.f32 %v575_v46, %v370_v47  ;;  %v647_v50 = vmul.f32 %v370_v47, %v370_v47  ;;  %v709_v51 = vadd.f32 %v708_v43, %v646_v42  ;;  %v1495_v52 = vpop.f32.mrb[18].mxu0  ;;  %v1972_v57 = vpop.f32.mrb[18].mxu1 }
 0x118   :  { %v1277_v54 = vpack.c.bf16 %v1495_v52, %v1494_v44  ;;  %v373_v55 = vpop.f32.mrb[19].mxu0  ;;  %v1974_v63 = vpop.f32.mrb[19].mxu1  ;;  %v1357_v1 = vpack.c.bf16 %v1972_v57, %v1968_v48  ;;  %v650_v7 = vmul.f32 %v1495_v52, %v1495_v52 }
 0x119   :  { %v710_v58 = vadd.f32 %v709_v51, %v647_v50  ;;  %v577_v59 = vadd.f32 %v576_v49, %v373_v55  ;;  %v648_v60 = vmul.f32 %v373_v55, %v373_v55  ;;  %v1272_v62 = vpack.c.bf16 %v373_v55, %v370_v47 }
 0x11a   :  { %1397 = vst [vmem:[%s2168_s2 + $0x48] sm:$0xff] %v1277_v54   ;;  %v1352_v2 = vpack.c.bf16 %v1974_v63, %v1970_v53  ;;  %1413 = vst [vmem:[%s2168_s2 + $0xc8] sm:$0xff] %v1357_v1  }
 0x11b   :  { %v578_v4 = vadd.f32 %v1494_v44, %v577_v59  ;;  %v711_v6 = vadd.f32 %v710_v58, %v648_v60  ;;  %1396 = vst [vmem:[%s2168_s2 + $0x40] sm:$0xff] %v1272_v62  }
 0x11c   :  { %1412 = vst [vmem:[%s2168_s2 + $0xc0] sm:$0xff] %v1352_v2  }
 0x11d   :  { %v712_v8 = vadd.f32 %v711_v6, %v649_v3  ;;  %v1498_v9 = vpop.f32.mrb[20].mxu0  ;;  %v579_v10 = vadd.f32 %v1495_v52, %v578_v4  ;;  %v1992_v14 = vpop.f32.mrb[20].mxu1 }
 0x11e   :  { %v386_v12 = vpop.f32.mrb[21].mxu0  ;;  %v1994_v22 = vpop.f32.mrb[21].mxu1  ;;  %v653_v38 = vmul.f32 %v1498_v9, %v1498_v9 }
 0x11f   :  { %v580_v15 = vadd.f32 %v579_v10, %v386_v12  ;;  %v651_v17 = vmul.f32 %v386_v12, %v386_v12  ;;  %v713_v18 = vadd.f32 %v712_v8, %v650_v7  ;;  %v1499_v20 = vpop.f32.mrb[22].mxu0  ;;  %v1996_v26 = vpop.f32.mrb[22].mxu1 }
 0x120   :  { %v1287_v23 = vpack.c.bf16 %v1499_v20, %v1498_v9  ;;  %v389_v24 = vpop.f32.mrb[23].mxu0  ;;  %v1998_v33 = vpop.f32.mrb[23].mxu1  ;;  %v1367_v35 = vpack.c.bf16 %v1996_v26, %v1992_v14  ;;  %v654_v42 = vmul.f32 %v1499_v20, %v1499_v20 }
 0x121   :  { %v714_v27 = vadd.f32 %v713_v18, %v651_v17  ;;  %v581_v29 = vadd.f32 %v580_v15, %v389_v24  ;;  %v652_v30 = vmul.f32 %v389_v24, %v389_v24  ;;  %v1282_v31 = vpack.c.bf16 %v389_v24, %v386_v12 }
 0x122   :  { %1399 = vst [vmem:[%s2168_s2 + $0x58] sm:$0xff] %v1287_v23   ;;  %v1362_v36 = vpack.c.bf16 %v1998_v33, %v1994_v22  ;;  %1415 = vst [vmem:[%s2168_s2 + $0xd8] sm:$0xff] %v1367_v35  }
 0x123   :  { %v582_v39 = vadd.f32 %v1498_v9, %v581_v29  ;;  %v715_v41 = vadd.f32 %v714_v27, %v652_v30  ;;  %1398 = vst [vmem:[%s2168_s2 + $0x50] sm:$0xff] %v1282_v31  }
 0x124   :  { %1414 = vst [vmem:[%s2168_s2 + $0xd0] sm:$0xff] %v1362_v36  }
 0x125   :  { %v716_v43 = vadd.f32 %v715_v41, %v653_v38  ;;  %v1502_v44 = vpop.f32.mrb[24].mxu0  ;;  %v583_v46 = vadd.f32 %v1499_v20, %v582_v39  ;;  %v2016_v49 = vpop.f32.mrb[24].mxu1 }
 0x126   :  { %v402_v47 = vpop.f32.mrb[25].mxu0  ;;  %v2018_v55 = vpop.f32.mrb[25].mxu1  ;;  %v657_v8 = vmul.f32 %v1502_v44, %v1502_v44 }
 0x127   :  { %v584_v50 = vadd.f32 %v583_v46, %v402_v47  ;;  %v655_v51 = vmul.f32 %v402_v47, %v402_v47  ;;  %v717_v52 = vadd.f32 %v716_v43, %v654_v42  ;;  %v1503_v54 = vpop.f32.mrb[26].mxu0  ;;  %v2020_v60 = vpop.f32.mrb[26].mxu1 }
 0x128   :  { %v1297_v58 = vpack.c.bf16 %v1503_v54, %v1502_v44  ;;  %v405_v59 = vpop.f32.mrb[27].mxu0  ;;  %v2022_v4 = vpop.f32.mrb[27].mxu1  ;;  %v1377_v6 = vpack.c.bf16 %v2020_v60, %v2016_v49  ;;  %v658_v12 = vmul.f32 %v1503_v54, %v1503_v54 }
 0x129   :  { %v718_v62 = vadd.f32 %v717_v52, %v655_v51  ;;  %v585_v1 = vadd.f32 %v584_v50, %v405_v59  ;;  %v656_v2 = vmul.f32 %v405_v59, %v405_v59  ;;  %v1292_v3 = vpack.c.bf16 %v405_v59, %v402_v47 }
 0x12a   :  { %1401 = vst [vmem:[%s2168_s2 + $0x68] sm:$0xff] %v1297_v58   ;;  %v1372_v7 = vpack.c.bf16 %v2022_v4, %v2018_v55  ;;  %1417 = vst [vmem:[%s2168_s2 + $0xe8] sm:$0xff] %v1377_v6  }
 0x12b   :  { %v586_v9 = vadd.f32 %v1502_v44, %v585_v1  ;;  %v719_v10 = vadd.f32 %v718_v62, %v656_v2  ;;  %1400 = vst [vmem:[%s2168_s2 + $0x60] sm:$0xff] %v1292_v3   ;;  %v663_v62 = vmul.f32 %v1874_v13, %v1874_v13 }
 0x12c   :  { %1416 = vst [vmem:[%s2168_s2 + $0xe0] sm:$0xff] %v1372_v7   ;;  %v664_v7 = vmul.f32 %v1878_v21, %v1878_v21 }
 0x12d   :  { %v720_v15 = vadd.f32 %v719_v10, %v657_v8  ;;  %v1506_v17 = vpop.f32.mrb[28].mxu0  ;;  %v587_v18 = vadd.f32 %v1503_v54, %v586_v9  ;;  %v2040_v23 = vpop.f32.mrb[28].mxu1  ;;  %v665_v8 = vmul.f32 %v1872_v11, %v1872_v11 }
 0x12e   :  { %v418_v20 = vpop.f32.mrb[29].mxu0  ;;  %v2042_v31 = vpop.f32.mrb[29].mxu1  ;;  %v661_v50 = vmul.f32 %v1506_v17, %v1506_v17 }
 0x12f   :  { %v588_v24 = vadd.f32 %v587_v18, %v418_v20  ;;  %v659_v27 = vmul.f32 %v418_v20, %v418_v20  ;;  %v721_v29 = vadd.f32 %v720_v15, %v658_v12  ;;  %v1507_v30 = vpop.f32.mrb[30].mxu0  ;;  %v2044_v38 = vpop.f32.mrb[30].mxu1  ;;  %v666_v12 = vmul.f32 %v1876_v16, %v1876_v16 }
 0x130   :  { %v1307_v35 = vpack.c.bf16 %v1507_v30, %v1506_v17  ;;  %v421_v36 = vpop.f32.mrb[31].mxu0  ;;  %v2046_v44 = vpop.f32.mrb[31].mxu1  ;;  %v1387_v46 = vpack.c.bf16 %v2044_v38, %v2040_v23  ;;  %v662_v54 = vmul.f32 %v1507_v30, %v1507_v30 }
 0x131   :  { %v722_v39 = vadd.f32 %v721_v29, %v659_v27  ;;  %v589_v41 = vadd.f32 %v588_v24, %v421_v36  ;;  %v660_v42 = vmul.f32 %v421_v36, %v421_v36  ;;  %v1302_v43 = vpack.c.bf16 %v421_v36, %v418_v20 }
 0x132   :  { %1403 = vst [vmem:[%s2168_s2 + $0x78] sm:$0xff] %v1307_v35   ;;  %v1382_v47 = vpack.c.bf16 %v2046_v44, %v2042_v31  ;;  %1419 = vst [vmem:[%s2168_s2 + $0xf8] sm:$0xff] %v1387_v46   ;;  %v668_v27 = vmul.f32 %v1902_v45, %v1902_v45 }
 0x133   :  { %v590_v51 = vadd.f32 %v1506_v17, %v589_v41  ;;  %v723_v52 = vadd.f32 %v722_v39, %v660_v42  ;;  %1402 = vst [vmem:[%s2168_s2 + $0x70] sm:$0xff] %v1302_v43   ;;  %v672_v43 = vmul.f32 %v1926_v5, %v1926_v5 }
 0x134   :  { %1418 = vst [vmem:[%s2168_s2 + $0xf0] sm:$0xff] %v1382_v47  }
 0x135   :  { %v724_v58 = vadd.f32 %v723_v52, %v661_v50  ;;  %v591_v59 = vadd.f32 %v1507_v30, %v590_v51 }
 0x137   :  { %v592_v1 = vadd.f32 %v591_v59, %v1874_v13  ;;  %v725_v2 = vadd.f32 %v724_v58, %v662_v54  ;;  %v667_v13 = vmul.f32 %v1898_v37, %v1898_v37  ;;  %v676_v59 = vmul.f32 %v1950_v34, %v1950_v34 }
 0x139   :  { %v726_v3 = vadd.f32 %v725_v2, %v663_v62  ;;  %v593_v6 = vadd.f32 %v592_v1, %v1878_v21 }
 0x13b   :  { %v594_v9 = vadd.f32 %v1872_v11, %v593_v6  ;;  %v727_v10 = vadd.f32 %v726_v3, %v664_v7  ;;  %v669_v11 = vmul.f32 %v1896_v32, %v1896_v32 }
 0x13d   :  { %v728_v15 = vadd.f32 %v727_v10, %v665_v8  ;;  %v595_v17 = vadd.f32 %v1876_v16, %v594_v9  ;;  %v670_v16 = vmul.f32 %v1900_v40, %v1900_v40  ;;  %v680_v9 = vmul.f32 %v1974_v63, %v1974_v63 }
 0x13f   :  { %v596_v18 = vadd.f32 %v595_v17, %v1898_v37  ;;  %v729_v20 = vadd.f32 %v728_v15, %v666_v12  ;;  %v671_v37 = vmul.f32 %v1922_v61, %v1922_v61 }
 0x141   :  { %v730_v24 = vadd.f32 %v729_v20, %v667_v13  ;;  %v597_v21 = vadd.f32 %v596_v18, %v1902_v45 }
 0x143   :  { %v598_v29 = vadd.f32 %v1896_v32, %v597_v21  ;;  %v731_v30 = vadd.f32 %v730_v24, %v668_v27  ;;  %v673_v32 = vmul.f32 %v1920_v56, %v1920_v56  ;;  %v684_v24 = vmul.f32 %v1998_v33, %v1998_v33 }
 0x145   :  { %v732_v35 = vadd.f32 %v731_v30, %v669_v11  ;;  %v599_v36 = vadd.f32 %v1900_v40, %v598_v29  ;;  %v674_v40 = vmul.f32 %v1924_v0, %v1924_v0 }
 0x147   :  { %v600_v39 = vadd.f32 %v599_v36, %v1922_v61  ;;  %v733_v41 = vadd.f32 %v732_v35, %v670_v16  ;;  %v675_v61 = vmul.f32 %v1946_v25, %v1946_v25  ;;  %v688_v36 = vmul.f32 %v2022_v4, %v2022_v4 }
 0x149   :  { %v734_v42 = vadd.f32 %v733_v41, %v671_v37  ;;  %v601_v45 = vadd.f32 %v600_v39, %v1926_v5 }
 0x14b   :  { %v602_v46 = vadd.f32 %v1920_v56, %v601_v45  ;;  %v735_v47 = vadd.f32 %v734_v42, %v672_v43  ;;  %v677_v56 = vmul.f32 %v1944_v19, %v1944_v19 }
 0x14d   :  { %v736_v50 = vadd.f32 %v735_v47, %v673_v32  ;;  %v603_v51 = vadd.f32 %v1924_v0, %v602_v46  ;;  %v678_v0 = vmul.f32 %v1948_v28, %v1948_v28  ;;  %v692_v46 = vmul.f32 %v2046_v44, %v2046_v44 }
 0x14f   :  { %v604_v52 = vadd.f32 %v603_v51, %v1946_v25  ;;  %v737_v54 = vadd.f32 %v736_v50, %v674_v40  ;;  %v679_v25 = vmul.f32 %v1970_v53, %v1970_v53 }
 0x151   :  { %v738_v58 = vadd.f32 %v737_v54, %v675_v61  ;;  %v605_v5 = vadd.f32 %v604_v52, %v1950_v34 }
 0x153   :  { %v606_v62 = vadd.f32 %v1944_v19, %v605_v5  ;;  %v739_v1 = vadd.f32 %v738_v58, %v676_v59  ;;  %v681_v19 = vmul.f32 %v1968_v48, %v1968_v48 }
 0x155   :  { %v740_v2 = vadd.f32 %v739_v1, %v677_v56  ;;  %v607_v3 = vadd.f32 %v1948_v28, %v606_v62  ;;  %v682_v28 = vmul.f32 %v1972_v57, %v1972_v57 }
 0x157   :  { %v608_v6 = vadd.f32 %v607_v3, %v1970_v53  ;;  %v741_v7 = vadd.f32 %v740_v2, %v678_v0  ;;  %v683_v53 = vmul.f32 %v1994_v22, %v1994_v22 }
 0x159   :  { %v742_v8 = vadd.f32 %v741_v7, %v679_v25  ;;  %v609_v34 = vadd.f32 %v608_v6, %v1974_v63 }
 0x15b   :  { %v610_v10 = vadd.f32 %v1968_v48, %v609_v34  ;;  %v743_v12 = vadd.f32 %v742_v8, %v680_v9  ;;  %v685_v48 = vmul.f32 %v1992_v14, %v1992_v14 }
 0x15d   :  { %v744_v15 = vadd.f32 %v743_v12, %v681_v19  ;;  %v611_v17 = vadd.f32 %v1972_v57, %v610_v10  ;;  %v686_v57 = vmul.f32 %v1996_v26, %v1996_v26 }
 0x15f   :  { %v612_v13 = vadd.f32 %v611_v17, %v1994_v22  ;;  %v745_v18 = vadd.f32 %v744_v15, %v682_v28  ;;  %v687_v22 = vmul.f32 %v2018_v55, %v2018_v55 }
 0x161   :  { %v746_v20 = vadd.f32 %v745_v18, %v683_v53  ;;  %v613_v63 = vadd.f32 %v612_v13, %v1998_v33 }
 0x163   :  { %v614_v21 = vadd.f32 %v1992_v14, %v613_v63  ;;  %v747_v27 = vadd.f32 %v746_v20, %v684_v24  ;;  %v689_v14 = vmul.f32 %v2016_v49, %v2016_v49 }
 0x165   :  { %v748_v11 = vadd.f32 %v747_v27, %v685_v48  ;;  %v615_v29 = vadd.f32 %v1996_v26, %v614_v21  ;;  %v690_v26 = vmul.f32 %v2020_v60, %v2020_v60 }
 0x167   :  { %v616_v30 = vadd.f32 %v615_v29, %v2018_v55  ;;  %v749_v16 = vadd.f32 %v748_v11, %v686_v57  ;;  %v691_v55 = vmul.f32 %v2042_v31, %v2042_v31 }
 0x169   :  { %v750_v35 = vadd.f32 %v749_v16, %v687_v22  ;;  %v617_v33 = vadd.f32 %v616_v30, %v2022_v4 }
 0x16b   :  { %v618_v37 = vadd.f32 %v2016_v49, %v617_v33  ;;  %v751_v39 = vadd.f32 %v750_v35, %v688_v36  ;;  %v693_v49 = vmul.f32 %v2040_v23, %v2040_v23 }
 0x16d   :  { %v752_v41 = vadd.f32 %v751_v39, %v689_v14  ;;  %v619_v42 = vadd.f32 %v2020_v60, %v618_v37  ;;  %v694_v60 = vmul.f32 %v2044_v38, %v2044_v38 }
 0x16f   :  { %v620_v45 = vadd.f32 %v619_v42, %v2042_v31  ;;  %v753_v43 = vadd.f32 %v752_v41, %v690_v26 }
 0x171   :  { %v754_v32 = vadd.f32 %v753_v43, %v691_v55  ;;  %v621_v4 = vadd.f32 %v620_v45, %v2046_v44 }
 0x173   :  { %v622_v47 = vadd.f32 %v2040_v23, %v621_v4  ;;  %v755_v40 = vadd.f32 %v754_v32, %v692_v46 }
 0x175   :  { %v623_v50 = vadd.f32 %v2044_v38, %v622_v47  ;;  %v756_v51 = vadd.f32 %v755_v40, %v693_v49 }
 0x177   :  { %v624_v31 = vrot.slane %v623_v50, 4  ;;  %v757_v61 = vadd.f32 %v756_v51, %v694_v60 }
 0x179   :  { %v625_v52 = vadd.f32 %v624_v31, %v623_v50  ;;  %v758_v54 = vrot.slane %v757_v61, 4 }
 0x17b   :  { %v626_v58 = vrot.slane %v625_v52, 2  ;;  %v759_v5 = vadd.f32 %v758_v54, %v757_v61 }
 0x17d   :  { %v627_v59 = vadd.f32 %v626_v58, %v625_v52  ;;  %v760_v44 = vrot.slane %v759_v5, 2 }
 0x17f   :  { %v628_v56 = vrot.slane %v627_v59, 1  ;;  %v761_v62 = vadd.f32 %v760_v44, %v759_v5 }
 0x181   :  { %v629_v1 = vadd.f32 %v628_v56, %v627_v59  ;;  %v762_v0 = vrot.slane %v761_v62, 1 }
 0x183   :  { %630 = vst [vmem:[%s2169_s3] sm:$0x1] %v629_v1  ;;  %v763_v23 = vadd.f32 %v762_v0, %v761_v62 }
 0x185   :  { %764 = vst [vmem:[%s2169_s3 + $0x1] sm:$0x1] %v763_v23 }

// kernel: _forward.5
= control target key start
LH: loop header
LB: loop body
LE: loop exit
PB: predicated region body
PF: predicated region fallthrough
CT: control target
= control target key end

     0   :  { %s2519_s3 = inlined_call_operand.vmem [shape: bf16[128,128], index: 3, kind: input, shape index: {}]   ;;  %s2520_s0 = inlined_call_operand.vmem [shape: bf16[512,128], index: 0, kind: input, shape index: {}]   ;;  %s2521_s1 = inlined_call_operand.vmem [shape: f32[1,128], index: 1, kind: input, shape index: {}]   ;;  %s2522_s2 = inlined_call_operand.vmem [shape: f32[1,128], index: 2, kind: input, shape index: {}]   ;;  %s2523_s4 = inlined_call_operand.vmem [shape: bf16[512,128], index: 4, kind: output, shape index: {0}]   ;;  %s2524_s5 = inlined_call_operand.vmem [shape: f32[1,2,128], index: 5, kind: output, shape index: {1}]  }
   0x1   :  { %v1895_v0 = vld [vmem:[%s2519_s3] sm:$0xff]   ;;  %v1896_v1 = vld [vmem:[%s2519_s3 + $0x8] sm:$0xff]   ;;  %v1897_v2 = vld [vmem:[%s2519_s3 + $0x10] sm:$0xff]  }
   0x2   :  { %1799 = vmatprep.subr.bf16.mxu0 %v1895_v0  ;;  %1879 = vmatprep.subr.bf16.mxu1 %v1895_v0  ;;  %v1898_v3 = vld [vmem:[%s2519_s3 + $0x18] sm:$0xff]   ;;  %v1410_v4 = vld [vmem:[%s2520_s0] sm:$0xff]   ;;  %v1697_v8 = vld [vmem:[%s2520_s0 + $0x8] sm:$0xff]  }
   0x3   :  { %1800 = vmatpush3.bf16.msra.mxu0 %v1895_v0  ;;  %1887 = vmatpush3.bf16.msra.mxu1 %v1895_v0  ;;  %v1951_v5 = vld [vmem:[%s2521_s1] ss:$0 sm:$0xff]  ;;  %v1411_v6 = vunpack.c.l.bf16 %v1410_v4  ;;  %v1412_v7 = vunpack.c.h.bf16 %v1410_v4  ;;  %v1698_v9 = vld [vmem:[%s2520_s0 + $0x10] sm:$0xff]   ;;  %v1415_v14 = vunpack.c.l.bf16 %v1697_v8  ;;  %v1416_v15 = vunpack.c.h.bf16 %v1697_v8  ;;  %v1900_v22 = vld [vmem:[%s2519_s3 + $0x28] sm:$0xff]  }
   0x4   :  { %1801 = vmatprep.subr.bf16.mxu0 %v1896_v1  ;;  %1880 = vmatprep.subr.bf16.mxu1 %v1896_v1  ;;  %v1962_v10 = vld [vmem:[%s2522_s2] ss:$0 sm:$0xff]  ;;  %v1419_v16 = vunpack.c.l.bf16 %v1698_v9  ;;  %v1420_v19 = vunpack.c.h.bf16 %v1698_v9  ;;  %v1699_v26 = vld [vmem:[%s2520_s0 + $0x18] sm:$0xff]   ;;  %v1901_v31 = vld [vmem:[%s2519_s3 + $0x30] sm:$0xff]  }
   0x5   :  { %v155_v11 = vmul.f32 %v1411_v6, %v1951_v5  ;;  %v156_v12 = vmul.f32 %v1412_v7, %v1951_v5  ;;  %v1899_v13 = vld [vmem:[%s2519_s3 + $0x20] sm:$0xff]   ;;  %v157_v23 = vmul.f32 %v1415_v14, %v1951_v5  ;;  %v158_v24 = vmul.f32 %v1416_v15, %v1951_v5  ;;  %v1701_v38 = vld [vmem:[%s2520_s0 + $0x28] sm:$0xff]   ;;  %v1702_v41 = vld [vmem:[%s2520_s0 + $0x30] sm:$0xff]  }
   0x6   :  { %v159_v25 = vmul.f32 %v1419_v16, %v1951_v5  ;;  %v160_v28 = vmul.f32 %v1420_v19, %v1951_v5  ;;  %v1700_v29 = vld [vmem:[%s2520_s0 + $0x20] sm:$0xff]   ;;  %v1423_v30 = vunpack.c.l.bf16 %v1699_v26  ;;  %v1424_v35 = vunpack.c.h.bf16 %v1699_v26  ;;  %v1703_v42 = vld [vmem:[%s2520_s0 + $0x38] sm:$0xff]   ;;  %v1705_v63 = vld [vmem:[%s2520_s0 + $0x48] sm:$0xff]  }
   0x7   :  { %1802 = vmatpush3.bf16.msra.mxu0 %v1896_v1  ;;  %1888 = vmatpush3.bf16.msra.mxu1 %v1896_v1  ;;  %v226_v17 = vadd.f32 %v1962_v10, %v155_v11  ;;  %v227_v18 = vadd.f32 %v1962_v10, %v156_v12  ;;  %v228_v32 = vadd.f32 %v1962_v10, %v157_v23  ;;  %v1427_v37 = vunpack.c.l.bf16 %v1700_v29  ;;  %v1902_v43 = vld [vmem:[%s2519_s3 + $0x38] sm:$0xff]   ;;  %v1704_v48 = vld [vmem:[%s2520_s0 + $0x40] sm:$0xff]   ;;  %v1706_v4 = vld [vmem:[%s2520_s0 + $0x50] sm:$0xff]  }
   0x8   :  { %1803 = vmatprep.subr.bf16.mxu0 %v1897_v2  ;;  %1881 = vmatprep.subr.bf16.mxu1 %v1897_v2  ;;  %v229_v33 = vadd.f32 %v1962_v10, %v158_v24  ;;  %v230_v34 = vadd.f32 %v1962_v10, %v159_v25  ;;  %v231_v36 = vadd.f32 %v1962_v10, %v160_v28  ;;  %v1428_v40 = vunpack.c.h.bf16 %v1700_v29  ;;  %v1707_v23 = vld [vmem:[%s2520_s0 + $0x58] sm:$0xff]  }
   0x9   :  { %v290_v20 = vmax.f32 %v226_v17, 0.0  ;;  %v291_v21 = vmax.f32 %v227_v18, 0.0  ;;  %v161_v39 = vmul.f32 %v1423_v30, %v1951_v5  ;;  %v292_v44 = vmax.f32 %v228_v32, 0.0 }
   0xa   :  { %v293_v45 = vmax.f32 %v229_v33, 0.0  ;;  %v294_v46 = vmax.f32 %v230_v34, 0.0  ;;  %v162_v47 = vmul.f32 %v1424_v35, %v1951_v5  ;;  %v295_v49 = vmax.f32 %v231_v36, 0.0 }
   0xb   :  { %1804 = vmatpush3.bf16.msra.mxu0 %v1897_v2  ;;  %1889 = vmatpush3.bf16.msra.mxu1 %v1897_v2  ;;  %v354_v27 = vpack.c.bf16 %v291_v21, %v290_v20  ;;  %v163_v50 = vmul.f32 %v1427_v37, %v1951_v5  ;;  %v1431_v51 = vunpack.c.l.bf16 %v1701_v38  ;;  %v1432_v52 = vunpack.c.h.bf16 %v1701_v38 }
   0xc   :  { %1805 = vmatprep.subr.bf16.mxu0 %v1898_v3  ;;  %1882 = vmatprep.subr.bf16.mxu1 %v1898_v3  ;;  %v1435_v53 = vunpack.c.l.bf16 %v1702_v41  ;;  %v1436_v54 = vunpack.c.h.bf16 %v1702_v41  ;;  %v1439_v55 = vunpack.c.l.bf16 %v1703_v42  ;;  %v1440_v56 = vunpack.c.h.bf16 %v1703_v42 }
   0xd   :  { %1815 = vmatprep.mubr.bf16.mxu0 %v354_v27  ;;  %v164_v57 = vmul.f32 %v1428_v40, %v1951_v5  ;;  %v1443_v58 = vunpack.c.l.bf16 %v1704_v48  ;;  %v1444_v59 = vunpack.c.h.bf16 %v1704_v48  ;;  %v355_v60 = vpack.c.bf16 %v293_v45, %v292_v44  ;;  %v1712_v44 = vld [vmem:[%s2520_s0 + $0x80] sm:$0xff]  }
   0xe   :  { %v232_v61 = vadd.f32 %v1962_v10, %v161_v39  ;;  %v233_v62 = vadd.f32 %v1962_v10, %v162_v47  ;;  %v356_v0 = vpack.c.bf16 %v295_v49, %v294_v46  ;;  %v234_v1 = vadd.f32 %v1962_v10, %v163_v50 }
   0xf   :  { %1806 = vmatpush3.bf16.msra.mxu0 %v1898_v3  ;;  %1890 = vmatpush3.bf16.msra.mxu1 %v1898_v3  ;;  %v165_v2 = vmul.f32 %v1431_v51, %v1951_v5  ;;  %v166_v3 = vmul.f32 %v1432_v52, %v1951_v5  ;;  %v167_v6 = vmul.f32 %v1435_v53, %v1951_v5  ;;  %v1447_v14 = vunpack.c.l.bf16 %v1705_v63  ;;  %v2055_v52 = vld [vmem:[%s2520_s0 + $0x60] sm:$0xff]  }
  0x10   :  { %1807 = vmatprep.subr.bf16.mxu0 %v1899_v13  ;;  %1883 = vmatprep.subr.bf16.mxu1 %v1899_v13  ;;  %v168_v7 = vmul.f32 %v1436_v54, %v1951_v5  ;;  %v169_v8 = vmul.f32 %v1439_v55, %v1951_v5  ;;  %v170_v9 = vmul.f32 %v1440_v56, %v1951_v5  ;;  %v296_v15 = vmax.f32 %v232_v61, 0.0 }
  0x11   :  { %v235_v11 = vadd.f32 %v1962_v10, %v164_v57  ;;  %v171_v12 = vmul.f32 %v1443_v58, %v1951_v5  ;;  %v297_v16 = vmax.f32 %v233_v62, 0.0  ;;  %v1448_v17 = vunpack.c.h.bf16 %v1705_v63 }
  0x12   :  { %v1451_v18 = vunpack.c.l.bf16 %v1706_v4  ;;  %v298_v19 = vmax.f32 %v234_v1, 0.0  ;;  %v236_v20 = vadd.f32 %v1962_v10, %v165_v2  ;;  %v237_v21 = vadd.f32 %v1962_v10, %v166_v3 }
  0x13   :  { %1808 = vmatpush3.bf16.msra.mxu0 %v1899_v13  ;;  %1891 = vmatpush3.bf16.msra.mxu1 %v1899_v13  ;;  %v172_v13 = vmul.f32 %v1444_v59, %v1951_v5  ;;  %v238_v24 = vadd.f32 %v1962_v10, %v167_v6  ;;  %v239_v25 = vadd.f32 %v1962_v10, %v168_v7  ;;  %v299_v28 = vmax.f32 %v235_v11, 0.0  ;;  %v1713_v59 = vld [vmem:[%s2520_s0 + $0x88] sm:$0xff]   ;;  %v1715_v11 = vld [vmem:[%s2520_s0 + $0x98] sm:$0xff]  }
  0x14   :  { %1809 = vmatprep.subr.bf16.mxu0 %v1900_v22  ;;  %1884 = vmatprep.subr.bf16.mxu1 %v1900_v22  ;;  %v240_v26 = vadd.f32 %v1962_v10, %v169_v8  ;;  %v241_v27 = vadd.f32 %v1962_v10, %v170_v9  ;;  %v242_v29 = vadd.f32 %v1962_v10, %v171_v12  ;;  %v1455_v35 = vunpack.c.l.bf16 %v1707_v23 }
  0x15   :  { %v243_v30 = vadd.f32 %v1962_v10, %v172_v13  ;;  %v357_v32 = vpack.c.bf16 %v297_v16, %v296_v15  ;;  %v174_v33 = vmul.f32 %v1448_v17, %v1951_v5  ;;  %v175_v34 = vmul.f32 %v1451_v18, %v1951_v5 }
  0x16   :  { %v300_v36 = vmax.f32 %v236_v20, 0.0  ;;  %v301_v37 = vmax.f32 %v237_v21, 0.0  ;;  %v1456_v39 = vunpack.c.h.bf16 %v1707_v23  ;;  %v302_v40 = vmax.f32 %v238_v24, 0.0  ;;  %v1716_v24 = vld [vmem:[%s2520_s0 + $0xa0] sm:$0xff]  }
  0x17   :  { %1810 = vmatpush3.bf16.msra.mxu0 %v1900_v22  ;;  %1892 = vmatpush3.bf16.msra.mxu1 %v1900_v22  ;;  %v1452_v22 = vunpack.c.h.bf16 %v1706_v4  ;;  %v303_v41 = vmax.f32 %v239_v25, 0.0  ;;  %v304_v42 = vmax.f32 %v240_v26, 0.0  ;;  %v358_v45 = vpack.c.bf16 %v299_v28, %v298_v19 }
  0x18   :  { %1811 = vmatprep.subr.bf16.mxu0 %v1901_v31  ;;  %1885 = vmatprep.subr.bf16.mxu1 %v1901_v31  ;;  %v306_v46 = vmax.f32 %v242_v29, 0.0  ;;  %v307_v47 = vmax.f32 %v243_v30, 0.0  ;;  %v245_v49 = vadd.f32 %v1962_v10, %v174_v33  ;;  %v2049_v50 = vadd.f32 %v1962_v10, %v175_v34  ;;  %v1717_v33 = vld [vmem:[%s2520_s0 + $0xa8] sm:$0xff]  }
  0x19   :  { %v176_v38 = vmul.f32 %v1452_v22, %v1951_v5  ;;  %v177_v51 = vmul.f32 %v1455_v35, %v1951_v5  ;;  %v178_v54 = vmul.f32 %v1456_v39, %v1951_v5  ;;  %v1475_v55 = vunpack.c.l.bf16 %v1712_v44 }
  0x1a   :  { %v359_v56 = vpack.c.bf16 %v301_v37, %v300_v36  ;;  %v360_v57 = vpack.c.bf16 %v303_v41, %v302_v40  ;;  %v1459_v62 = vunpack.c.l.bf16 %v2055_v52  ;;  %v1476_v63 = vunpack.c.h.bf16 %v1712_v44 }
  0x1b   :  { %1812 = vmatpush3.bf16.msra.mxu0 %v1901_v31  ;;  %1893 = vmatpush3.bf16.msra.mxu1 %v1901_v31  ;;  %v173_v31 = vmul.f32 %v1447_v14, %v1951_v5  ;;  %v2058_v53 = vadd.f32 %v1962_v10, %v176_v38  ;;  %v309_v1 = vmax.f32 %v245_v49, 0.0  ;;  %v310_v2 = vmax.f32 %v2049_v50, 0.0 }
  0x1c   :  { %1813 = vmatprep.subr.bf16.mxu0 %v1902_v43  ;;  %1886 = vmatprep.subr.bf16.mxu1 %v1902_v43  ;;  %v2074_v3 = vadd.f32 %v1962_v10, %v177_v51  ;;  %v187_v4 = vmul.f32 %v1475_v55, %v1951_v5  ;;  %v2079_v7 = vadd.f32 %v1962_v10, %v178_v54  ;;  %v1479_v9 = vunpack.c.l.bf16 %v1713_v59 }
  0x1d   :  { %v244_v48 = vadd.f32 %v1962_v10, %v173_v31  ;;  %v311_v6 = vmax.f32 %v2058_v53, 0.0  ;;  %v188_v8 = vmul.f32 %v1476_v63, %v1951_v5  ;;  %v1460_v12 = vunpack.c.h.bf16 %v2055_v52 }
  0x1e   :  { %v258_v13 = vadd.f32 %v1962_v10, %v187_v4  ;;  %v1480_v14 = vunpack.c.h.bf16 %v1713_v59  ;;  %v2088_v16 = vmul.f32 %v1459_v62, %v1951_v5  ;;  %v189_v18 = vmul.f32 %v1479_v9, %v1951_v5 }
  0x1f   :  { %1814 = vmatpush3.bf16.msra.mxu0 %v1902_v43  ;;  %1894 = vmatpush3.bf16.msra.mxu1 %v1902_v43  ;;  %v305_v43 = vmax.f32 %v241_v27, 0.0  ;;  %v308_v61 = vmax.f32 %v244_v48, 0.0  ;;  %v259_v17 = vadd.f32 %v1962_v10, %v188_v8  ;;  %v1487_v23 = vunpack.c.l.bf16 %v1715_v11 }
  0x20   :  { %v322_v20 = vmax.f32 %v258_v13, 0.0  ;;  %v190_v21 = vmul.f32 %v1480_v14, %v1951_v5  ;;  %v260_v27 = vadd.f32 %v1962_v10, %v189_v18  ;;  %v1488_v31 = vunpack.c.h.bf16 %v1715_v11  ;;  %v1720_v18 = vld [vmem:[%s2520_s0 + $0xc0] sm:$0xff]  }
  0x21   :  { %v2061_v58 = vpack.c.bf16 %v305_v43, %v304_v42  ;;  %v2097_v25 = vpack.c.bf16 %v309_v1, %v308_v61  ;;  %v323_v26 = vmax.f32 %v259_v17, 0.0  ;;  %v1491_v37 = vunpack.c.l.bf16 %v1716_v24  ;;  %v1719_v1 = vld [vmem:[%s2520_s0 + $0xb8] sm:$0xff]  }
  0x22   :  { %1816 = vmatmul.mubr.bf16.vlgmr.msra.gmra.mrb[0].mxu0 %v355_v60  ;;  %v2066_v60 = vpack.c.bf16 %v307_v47, %v306_v46  ;;  %v261_v29 = vadd.f32 %v1962_v10, %v190_v21  ;;  %v324_v35 = vmax.f32 %v260_v27, 0.0  ;;  %v194_v40 = vmul.f32 %v1488_v31, %v1951_v5  ;;  %v1718_v46 = vld [vmem:[%s2520_s0 + $0xb0] sm:$0xff]   ;;  %v1709_v47 = vld [vmem:[%s2520_s0 + $0x68] sm:$0xff]  }
  0x23   :  { %1819 = vmatprep.mubr.bf16.mxu0 %v356_v0  ;;  %v1714_v0 = vld [vmem:[%s2520_s0 + $0x90] sm:$0xff]   ;;  %v370_v34 = vpack.c.bf16 %v323_v26, %v322_v20  ;;  %v1492_v43 = vunpack.c.h.bf16 %v1716_v24  ;;  %v195_v44 = vmul.f32 %v1491_v37, %v1951_v5  ;;  %v1496_v54 = vunpack.c.h.bf16 %v1717_v33 }
  0x24   :  { %v1483_v15 = vunpack.c.l.bf16 %v1714_v0  ;;  %v1484_v19 = vunpack.c.h.bf16 %v1714_v0  ;;  %v325_v38 = vmax.f32 %v261_v29, 0.0  ;;  %v265_v49 = vadd.f32 %v1962_v10, %v194_v40  ;;  %v1722_v40 = vld [vmem:[%s2520_s0 + $0xd0] sm:$0xff]  }
  0x25   :  { %1847 = vmatprep.mubr.bf16.mxu1 %v370_v34  ;;  %v198_v62 = vmul.f32 %v1496_v54, %v1951_v5  ;;  %v1499_v63 = vunpack.c.l.bf16 %v1718_v46  ;;  %v1500_v0 = vunpack.c.h.bf16 %v1718_v46  ;;  %v312_v4 = vmax.f32 %v2074_v3, 0.0 }
  0x26   :  { %v191_v22 = vmul.f32 %v1483_v15, %v1951_v5  ;;  %v192_v28 = vmul.f32 %v1484_v19, %v1951_v5  ;;  %v371_v48 = vpack.c.bf16 %v325_v38, %v324_v35  ;;  %v329_v61 = vmax.f32 %v265_v49, 0.0 }
  0x27   :  { %v1463_v8 = vunpack.c.l.bf16 %v1709_v47  ;;  %v313_v13 = vmax.f32 %v2079_v7, 0.0  ;;  %v1464_v14 = vunpack.c.h.bf16 %v1709_v47  ;;  %v199_v15 = vmul.f32 %v1499_v63, %v1951_v5 }
  0x28   :  { %v262_v30 = vadd.f32 %v1962_v10, %v191_v22  ;;  %v263_v36 = vadd.f32 %v1962_v10, %v192_v28  ;;  %1848 = vmatmul.mubr.bf16.vlgmr.msra.gmra.mrb[0].mxu1 %v371_v48  ;;  %v200_v17 = vmul.f32 %v1500_v0, %v1951_v5  ;;  %v180_v3 = vmul.f32 %v1460_v12, %v1951_v5 }
  0x29   :  { %v1503_v19 = vunpack.c.l.bf16 %v1719_v1  ;;  %v1504_v20 = vunpack.c.h.bf16 %v1719_v1  ;;  %v270_v24 = vadd.f32 %v1962_v10, %v199_v15  ;;  %v1507_v27 = vunpack.c.l.bf16 %v1720_v18  ;;  %v1723_v15 = vld [vmem:[%s2520_s0 + $0xd8] sm:$0xff]  }
  0x2a   :  { %1820 = vmatmul.mubr.bf16.gmra.mrb[4].mxu0 %v357_v32  ;;  %v193_v32 = vmul.f32 %v1487_v23, %v1951_v5  ;;  %v326_v39 = vmax.f32 %v262_v30, 0.0  ;;  %v327_v42 = vmax.f32 %v263_v36, 0.0  ;;  %v269_v23 = vadd.f32 %v1962_v10, %v198_v62 }
  0x2b   :  { %1823 = vmatprep.mubr.bf16.mxu0 %v358_v45  ;;  %v1495_v45 = vunpack.c.l.bf16 %v1717_v33  ;;  %v1508_v52 = vunpack.c.h.bf16 %v1720_v18  ;;  %v364_v12 = vpack.c.bf16 %v311_v6, %v310_v2  ;;  %v250_v28 = vadd.f32 %v1962_v10, %v2088_v16  ;;  %v1711_v33 = vld [vmem:[%s2520_s0 + $0x78] sm:$0xff]   ;;  %v1721_v16 = vld [vmem:[%s2520_s0 + $0xc8] sm:$0xff]  }
  0x2c   :  { %v264_v41 = vadd.f32 %v1962_v10, %v193_v32  ;;  %v372_v55 = vpack.c.bf16 %v327_v42, %v326_v39  ;;  %v251_v31 = vadd.f32 %v1962_v10, %v180_v3  ;;  %v181_v32 = vmul.f32 %v1463_v8, %v1951_v5 }
  0x2d   :  { %v197_v59 = vmul.f32 %v1495_v45, %v1951_v5  ;;  %v201_v34 = vmul.f32 %v1503_v19, %v1951_v5  ;;  %v202_v50 = vmul.f32 %v1504_v20, %v1951_v5  ;;  %v365_v35 = vpack.c.bf16 %v313_v13, %v312_v4 }
  0x2e   :  { %v328_v51 = vmax.f32 %v264_v41, 0.0  ;;  %1851 = vmatprep.mubr.bf16.mxu1 %v372_v55  ;;  %v182_v53 = vmul.f32 %v1464_v14, %v1951_v5  ;;  %v333_v6 = vmax.f32 %v269_v23, 0.0  ;;  %v334_v36 = vmax.f32 %v270_v24, 0.0 }
  0x2f   :  { %v268_v22 = vadd.f32 %v1962_v10, %v197_v59  ;;  %v203_v38 = vmul.f32 %v1507_v27, %v1951_v5  ;;  %v204_v39 = vmul.f32 %v1508_v52, %v1951_v5  ;;  %v314_v41 = vmax.f32 %v250_v28, 0.0 }
  0x30   :  { %v373_v21 = vpack.c.bf16 %v329_v61, %v328_v51  ;;  %v315_v45 = vmax.f32 %v251_v31, 0.0  ;;  %v272_v46 = vadd.f32 %v1962_v10, %v201_v34  ;;  %v273_v47 = vadd.f32 %v1962_v10, %v202_v50 }
  0x31   :  { %v332_v2 = vmax.f32 %v268_v22, 0.0  ;;  %v1511_v48 = vunpack.c.l.bf16 %v1721_v16  ;;  %v1512_v51 = vunpack.c.h.bf16 %v1721_v16  ;;  %v1515_v54 = vunpack.c.l.bf16 %v1722_v40 }
  0x32   :  { %1824 = vmatmul.mubr.bf16.gmra.mrb[8].mxu0 %v359_v56  ;;  %v196_v56 = vmul.f32 %v1492_v43, %v1951_v5  ;;  %1852 = vmatmul.mubr.bf16.gmra.mrb[4].mxu1 %v373_v21  ;;  %v1516_v55 = vunpack.c.h.bf16 %v1722_v40  ;;  %v275_v59 = vadd.f32 %v1962_v10, %v204_v39  ;;  %v253_v61 = vadd.f32 %v1962_v10, %v182_v53  ;;  %v1724_v21 = vld [vmem:[%s2520_s0 + $0xe0] sm:$0xff]  }
  0x33   :  { %1827 = vmatprep.mubr.bf16.mxu0 %v360_v57  ;;  %v266_v57 = vadd.f32 %v1962_v10, %v195_v44  ;;  %v1471_v44 = vunpack.c.l.bf16 %v1711_v33  ;;  %v375_v49 = vpack.c.bf16 %v333_v6, %v332_v2  ;;  %v1472_v0 = vunpack.c.h.bf16 %v1711_v33 }
  0x34   :  { %v267_v9 = vadd.f32 %v1962_v10, %v196_v56  ;;  %v252_v56 = vadd.f32 %v1962_v10, %v181_v32  ;;  %v366_v1 = vpack.c.bf16 %v315_v45, %v314_v41  ;;  %v336_v4 = vmax.f32 %v272_v46, 0.0  ;;  %v1726_v41 = vld [vmem:[%s2520_s0 + $0xf0] sm:$0xff]  }
  0x35   :  { %v330_v11 = vmax.f32 %v266_v57, 0.0  ;;  %v274_v57 = vadd.f32 %v1962_v10, %v203_v38  ;;  %v337_v8 = vmax.f32 %v273_v47, 0.0  ;;  %v207_v13 = vmul.f32 %v1515_v54, %v1951_v5 }
  0x36   :  { %v331_v7 = vmax.f32 %v267_v9, 0.0  ;;  %v205_v9 = vmul.f32 %v1511_v48, %v1951_v5  ;;  %v208_v14 = vmul.f32 %v1516_v55, %v1951_v5  ;;  %v339_v3 = vmax.f32 %v275_v59, 0.0 }
  0x37   :  { %v338_v18 = vmax.f32 %v274_v57, 0.0  ;;  %v186_v20 = vmul.f32 %v1472_v0, %v1951_v5  ;;  %v377_v23 = vpack.c.bf16 %v337_v8, %v336_v4  ;;  %v278_v27 = vadd.f32 %v1962_v10, %v207_v13 }
  0x38   :  { %v374_v26 = vpack.c.bf16 %v331_v7, %v330_v11  ;;  %v206_v11 = vmul.f32 %v1512_v51, %v1951_v5  ;;  %v317_v7 = vmax.f32 %v253_v61, 0.0  ;;  %v276_v24 = vadd.f32 %v1962_v10, %v205_v9 }
  0x39   :  { %v279_v52 = vadd.f32 %v1962_v10, %v208_v14  ;;  %v378_v28 = vpack.c.bf16 %v339_v3, %v338_v18  ;;  %v257_v33 = vadd.f32 %v1962_v10, %v186_v20  ;;  %v342_v2 = vmax.f32 %v278_v27, 0.0 }
  0x3a   :  { %1828 = vmatmul.mubr.bf16.gmra.mrb[12].mxu0 %v2061_v58  ;;  %v1710_v58 = vld [vmem:[%s2520_s0 + $0x70] sm:$0xff]   ;;  %1855 = vmatprep.mubr.bf16.mxu1 %v374_v26  ;;  %v1519_v26 = vunpack.c.l.bf16 %v1723_v15  ;;  %v340_v50 = vmax.f32 %v276_v24, 0.0  ;;  %v1531_v51 = vunpack.c.l.bf16 %v1726_v41  ;;  %v1532_v54 = vunpack.c.h.bf16 %v1726_v41 }
  0x3b   :  { %1831 = vmatprep.mubr.bf16.mxu0 %v2066_v60  ;;  %v271_v60 = vadd.f32 %v1962_v10, %v200_v17  ;;  %v1467_v29 = vunpack.c.l.bf16 %v1710_v58  ;;  %v1468_v30 = vunpack.c.h.bf16 %v1710_v58  ;;  %1856 = vmatmul.mubr.bf16.gmra.mrb[8].mxu1 %v375_v49  ;;  %v185_v17 = vmul.f32 %v1471_v44, %v1951_v5 }
  0x3c   :  { %v316_v58 = vmax.f32 %v252_v56, 0.0  ;;  %v343_v6 = vmax.f32 %v279_v52, 0.0  ;;  %v321_v40 = vmax.f32 %v257_v33, 0.0  ;;  %v216_v0 = vmul.f32 %v1532_v54, %v1951_v5 }
  0x3d   :  { %v335_v37 = vmax.f32 %v271_v60, 0.0  ;;  %v183_v42 = vmul.f32 %v1467_v29, %v1951_v5  ;;  %v184_v43 = vmul.f32 %v1468_v30, %v1951_v5  ;;  %v277_v60 = vadd.f32 %v1962_v10, %v206_v11 }
  0x3e   :  { %v1523_v29 = vunpack.c.l.bf16 %v1724_v21  ;;  %v1524_v30 = vunpack.c.h.bf16 %v1724_v21  ;;  %v367_v31 = vpack.c.bf16 %v317_v7, %v316_v58  ;;  %v256_v32 = vadd.f32 %v1962_v10, %v185_v17 }
  0x3f   :  { %v254_v62 = vadd.f32 %v1962_v10, %v183_v42  ;;  %v255_v63 = vadd.f32 %v1962_v10, %v184_v43  ;;  %v341_v53 = vmax.f32 %v277_v60, 0.0  ;;  %v380_v45 = vpack.c.bf16 %v343_v6, %v342_v2 }
  0x40   :  { %v212_v38 = vmul.f32 %v1524_v30, %v1951_v5  ;;  %v320_v39 = vmax.f32 %v256_v32, 0.0  ;;  %v287_v17 = vadd.f32 %v1962_v10, %v216_v0 }
  0x41   :  { %v318_v19 = vmax.f32 %v254_v62, 0.0  ;;  %v319_v22 = vmax.f32 %v255_v63, 0.0  ;;  %v379_v44 = vpack.c.bf16 %v341_v53, %v340_v50  ;;  %v215_v63 = vmul.f32 %v1531_v51, %v1951_v5 }
  0x42   :  { %1832 = vmatmul.mubr.bf16.gmra.mrb[16].mxu0 %v2097_v25  ;;  %v376_v25 = vpack.c.bf16 %v335_v37, %v334_v36  ;;  %v1725_v36 = vld [vmem:[%s2520_s0 + $0xe8] sm:$0xff]   ;;  %v211_v37 = vmul.f32 %v1523_v29, %v1951_v5  ;;  %v283_v49 = vadd.f32 %v1962_v10, %v212_v38  ;;  %v369_v55 = vpack.c.bf16 %v321_v40, %v320_v39 }
  0x43   :  { %1835 = vmatprep.mubr.bf16.mxu0 %v364_v12  ;;  %v1520_v12 = vunpack.c.h.bf16 %v1723_v15  ;;  %v368_v34 = vpack.c.bf16 %v319_v22, %v318_v19  ;;  %v1527_v43 = vunpack.c.l.bf16 %v1725_v36  ;;  %v1528_v47 = vunpack.c.h.bf16 %v1725_v36 }
  0x44   :  { %1859 = vmatprep.mubr.bf16.mxu1 %v376_v25  ;;  %v282_v48 = vadd.f32 %v1962_v10, %v211_v37  ;;  %v347_v62 = vmax.f32 %v283_v49, 0.0  ;;  %v286_v15 = vadd.f32 %v1962_v10, %v215_v63  ;;  %v351_v20 = vmax.f32 %v287_v17, 0.0 }
  0x45   :  { %1860 = vmatmul.mubr.bf16.gmra.mrb[12].mxu1 %v377_v23  ;;  %v210_v16 = vmul.f32 %v1520_v12, %v1951_v5  ;;  %v213_v56 = vmul.f32 %v1527_v43, %v1951_v5  ;;  %v214_v59 = vmul.f32 %v1528_v47, %v1951_v5 }
  0x46   :  { %1863 = vmatprep.mubr.bf16.mxu1 %v378_v28  ;;  %v346_v61 = vmax.f32 %v282_v48, 0.0  ;;  %v350_v19 = vmax.f32 %v286_v15, 0.0 }
  0x47   :  { %v281_v46 = vadd.f32 %v1962_v10, %v210_v16  ;;  %v284_v4 = vadd.f32 %v1962_v10, %v213_v56  ;;  %v285_v9 = vadd.f32 %v1962_v10, %v214_v59 }
  0x48   :  { %v382_v14 = vpack.c.bf16 %v347_v62, %v346_v61  ;;  %v384_v24 = vpack.c.bf16 %v351_v20, %v350_v19 }
  0x49   :  { %v345_v57 = vmax.f32 %v281_v46, 0.0  ;;  %v348_v18 = vmax.f32 %v284_v4, 0.0  ;;  %v349_v3 = vmax.f32 %v285_v9, 0.0 }
  0x4a   :  { %1836 = vmatmul.mubr.bf16.gmra.mrb[20].mxu0 %v365_v35  ;;  %v209_v35 = vmul.f32 %v1519_v26, %v1951_v5 }
  0x4b   :  { %1839 = vmatprep.mubr.bf16.mxu0 %v366_v1  ;;  %v1727_v1 = vld [vmem:[%s2520_s0 + $0xf8] sm:$0xff]   ;;  %v383_v21 = vpack.c.bf16 %v349_v3, %v348_v18 }
  0x4c   :  { %v280_v42 = vadd.f32 %v1962_v10, %v209_v35  ;;  %v1535_v11 = vunpack.c.l.bf16 %v1727_v1  ;;  %v1536_v13 = vunpack.c.h.bf16 %v1727_v1 }
  0x4d   :  { %1864 = vmatmul.mubr.bf16.gmra.mrb[16].mxu1 %v379_v44 }
  0x4e   :  { %v344_v25 = vmax.f32 %v280_v42, 0.0  ;;  %1867 = vmatprep.mubr.bf16.mxu1 %v380_v45  ;;  %v217_v58 = vmul.f32 %v1535_v11, %v1951_v5  ;;  %v218_v7 = vmul.f32 %v1536_v13, %v1951_v5 }
  0x50   :  { %v381_v8 = vpack.c.bf16 %v345_v57, %v344_v25  ;;  %v288_v22 = vadd.f32 %v1962_v10, %v217_v58  ;;  %v289_v23 = vadd.f32 %v1962_v10, %v218_v7 }
  0x52   :  { %1840 = vmatmul.mubr.bf16.gmra.mrb[24].mxu0 %v367_v31  ;;  %v352_v26 = vmax.f32 %v288_v22, 0.0  ;;  %v353_v60 = vmax.f32 %v289_v23, 0.0 }
  0x53   :  { %1843 = vmatprep.mubr.bf16.mxu0 %v368_v34 }
  0x54   :  { %v385_v27 = vpack.c.bf16 %v353_v60, %v352_v26 }
  0x55   :  { %1868 = vmatmul.mubr.bf16.gmra.mrb[20].mxu1 %v381_v8 }
  0x56   :  { %1871 = vmatprep.mubr.bf16.mxu1 %v382_v14 }
  0x5a   :  { %1844 = vmatmul.mubr.bf16.gmra.mrb[28].mxu0 %v369_v55 }
  0x5d   :  { %1872 = vmatmul.mubr.bf16.gmra.mrb[24].mxu1 %v383_v21 }
  0x5e   :  { %1875 = vmatprep.mubr.bf16.mxu1 %v384_v24 }
  0x65   :  { %1876 = vmatmul.mubr.bf16.gmra.mrb[28].mxu1 %v385_v27 }
  0xf5   :  { %v1817_v52 = vpop.f32.mrb[0].mxu0 }
  0xf6   :  { %v484_v12 = vpop.f32.mrb[1].mxu0  ;;  %v811_v10 = vmul.f32 %v1817_v52, %v1817_v52 }
  0xf7   :  { %v1818_v28 = vpop.f32.mrb[2].mxu0  ;;  %v809_v30 = vmul.f32 %v484_v12, %v484_v12 }
  0xf8   :  { %v1545_v29 = vpack.c.bf16 %v1818_v28, %v1817_v52  ;;  %v487_v5 = vpop.f32.mrb[3].mxu0  ;;  %v812_v35 = vmul.f32 %v1818_v28, %v1818_v28 }
  0xf9   :  { %v739_v31 = vadd.f32 %v487_v5, %v484_v12  ;;  %v810_v32 = vmul.f32 %v487_v5, %v487_v5  ;;  %v1540_v33 = vpack.c.bf16 %v487_v5, %v484_v12 }
  0xfa   :  { %1728 = vst [vmem:[%s2523_s4 + $0x8] sm:$0xff] %v1545_v29  }
  0xfb   :  { %v740_v34 = vadd.f32 %v1817_v52, %v739_v31  ;;  %v873_v50 = vadd.f32 %v810_v32, %v809_v30  ;;  %1541 = vst [vmem:[%s2523_s4] sm:$0xff] %v1540_v33   ;;  %v2243_v14 = vpop.f32.mrb[0].mxu1 }
  0xfc   :  { %v2245_v15 = vpop.f32.mrb[1].mxu1 }
  0xfd   :  { %v874_v53 = vadd.f32 %v873_v50, %v811_v10  ;;  %v1821_v2 = vpop.f32.mrb[4].mxu0  ;;  %v741_v6 = vadd.f32 %v1818_v28, %v740_v34  ;;  %v2247_v7 = vpop.f32.mrb[2].mxu1 }
  0xfe   :  { %v500_v16 = vpop.f32.mrb[5].mxu0  ;;  %v815_v46 = vmul.f32 %v1821_v2, %v1821_v2  ;;  %v1625_v20 = vpack.c.bf16 %v2247_v7, %v2243_v14  ;;  %v2251_v21 = vpop.f32.mrb[3].mxu1 }
  0xff   :  { %v742_v36 = vadd.f32 %v741_v6, %v500_v16  ;;  %v813_v37 = vmul.f32 %v500_v16, %v500_v16  ;;  %v875_v38 = vadd.f32 %v874_v53, %v812_v35  ;;  %v1822_v39 = vpop.f32.mrb[6].mxu0  ;;  %v1620_v52 = vpack.c.bf16 %v2251_v21, %v2245_v15 }
 0x100   :  { %v1555_v40 = vpack.c.bf16 %v1822_v39, %v1821_v2  ;;  %v503_v41 = vpop.f32.mrb[7].mxu0  ;;  %v816_v49 = vmul.f32 %v1822_v39, %v1822_v39  ;;  %1744 = vst [vmem:[%s2523_s4 + $0x88] sm:$0xff] %v1625_v20  }
 0x101   :  { %v876_v42 = vadd.f32 %v875_v38, %v813_v37  ;;  %v743_v43 = vadd.f32 %v742_v36, %v503_v41  ;;  %v814_v44 = vmul.f32 %v503_v41, %v503_v41  ;;  %v1550_v45 = vpack.c.bf16 %v503_v41, %v500_v16  ;;  %1743 = vst [vmem:[%s2523_s4 + $0x80] sm:$0xff] %v1620_v52  }
 0x102   :  { %1730 = vst [vmem:[%s2523_s4 + $0x18] sm:$0xff] %v1555_v40  }
 0x103   :  { %v744_v47 = vadd.f32 %v1821_v2, %v743_v43  ;;  %v877_v48 = vadd.f32 %v876_v42, %v814_v44  ;;  %1729 = vst [vmem:[%s2523_s4 + $0x10] sm:$0xff] %v1550_v45  }
 0x105   :  { %v878_v51 = vadd.f32 %v877_v48, %v815_v46  ;;  %v1825_v54 = vpop.f32.mrb[8].mxu0  ;;  %v745_v55 = vadd.f32 %v1822_v39, %v744_v47  ;;  %v2267_v33 = vpop.f32.mrb[4].mxu1 }
 0x106   :  { %v516_v56 = vpop.f32.mrb[9].mxu0  ;;  %v819_v9 = vmul.f32 %v1825_v54, %v1825_v54  ;;  %v2269_v10 = vpop.f32.mrb[5].mxu1 }
 0x107   :  { %v746_v25 = vadd.f32 %v745_v55, %v516_v56  ;;  %v817_v57 = vmul.f32 %v516_v56, %v516_v56  ;;  %v879_v59 = vadd.f32 %v878_v51, %v816_v49  ;;  %v1826_v61 = vpop.f32.mrb[10].mxu0  ;;  %v2271_v2 = vpop.f32.mrb[6].mxu1 }
 0x108   :  { %v1565_v62 = vpack.c.bf16 %v1826_v61, %v1825_v54  ;;  %v519_v63 = vpop.f32.mrb[11].mxu0  ;;  %v820_v17 = vmul.f32 %v1826_v61, %v1826_v61  ;;  %v1635_v16 = vpack.c.bf16 %v2271_v2, %v2267_v33  ;;  %v2275_v36 = vpop.f32.mrb[7].mxu1 }
 0x109   :  { %v880_v0 = vadd.f32 %v879_v59, %v817_v57  ;;  %v747_v1 = vadd.f32 %v746_v25, %v519_v63  ;;  %v818_v4 = vmul.f32 %v519_v63, %v519_v63  ;;  %v1560_v8 = vpack.c.bf16 %v519_v63, %v516_v56 }
 0x10a   :  { %1732 = vst [vmem:[%s2523_s4 + $0x28] sm:$0xff] %v1565_v62   ;;  %1746 = vst [vmem:[%s2523_s4 + $0x98] sm:$0xff] %v1635_v16   ;;  %v1630_v43 = vpack.c.bf16 %v2275_v36, %v2269_v10 }
 0x10b   :  { %v748_v11 = vadd.f32 %v1825_v54, %v747_v1  ;;  %v881_v13 = vadd.f32 %v880_v0, %v818_v4  ;;  %1731 = vst [vmem:[%s2523_s4 + $0x20] sm:$0xff] %v1560_v8  }
 0x10c   :  { %1745 = vst [vmem:[%s2523_s4 + $0x90] sm:$0xff] %v1630_v43  }
 0x10d   :  { %v882_v18 = vadd.f32 %v881_v13, %v819_v9  ;;  %v1829_v3 = vpop.f32.mrb[12].mxu0  ;;  %v749_v58 = vadd.f32 %v1826_v61, %v748_v11 }
 0x10e   :  { %v532_v19 = vpop.f32.mrb[13].mxu0  ;;  %v823_v30 = vmul.f32 %v1829_v3, %v1829_v3  ;;  %v2291_v54 = vpop.f32.mrb[8].mxu1 }
 0x10f   :  { %v750_v22 = vadd.f32 %v749_v58, %v532_v19  ;;  %v821_v23 = vmul.f32 %v532_v19, %v532_v19  ;;  %v883_v24 = vadd.f32 %v882_v18, %v820_v17  ;;  %v1830_v26 = vpop.f32.mrb[14].mxu0  ;;  %v2293_v55 = vpop.f32.mrb[9].mxu1 }
 0x110   :  { %v1575_v60 = vpack.c.bf16 %v1830_v26, %v1829_v3  ;;  %v535_v27 = vpop.f32.mrb[15].mxu0  ;;  %v824_v34 = vmul.f32 %v1830_v26, %v1830_v26  ;;  %v2295_v61 = vpop.f32.mrb[10].mxu1 }
 0x111   :  { %v884_v12 = vadd.f32 %v883_v24, %v821_v23  ;;  %v751_v28 = vadd.f32 %v750_v22, %v535_v27  ;;  %v822_v29 = vmul.f32 %v535_v27, %v535_v27  ;;  %v1570_v5 = vpack.c.bf16 %v535_v27, %v532_v19  ;;  %v2299_v0 = vpop.f32.mrb[11].mxu1 }
 0x112   :  { %1734 = vst [vmem:[%s2523_s4 + $0x38] sm:$0xff] %v1575_v60   ;;  %v1645_v63 = vpack.c.bf16 %v2295_v61, %v2291_v54  ;;  %v1640_v17 = vpack.c.bf16 %v2299_v0, %v2293_v55 }
 0x113   :  { %v752_v31 = vadd.f32 %v1829_v3, %v751_v28  ;;  %v885_v32 = vadd.f32 %v884_v12, %v822_v29  ;;  %1733 = vst [vmem:[%s2523_s4 + $0x30] sm:$0xff] %v1570_v5  }
 0x114   :  { %1748 = vst [vmem:[%s2523_s4 + $0xa8] sm:$0xff] %v1645_v63   ;;  %1747 = vst [vmem:[%s2523_s4 + $0xa0] sm:$0xff] %v1640_v17  }
 0x115   :  { %v886_v50 = vadd.f32 %v885_v32, %v823_v30  ;;  %v1833_v35 = vpop.f32.mrb[16].mxu0  ;;  %v753_v53 = vadd.f32 %v1830_v26, %v752_v31 }
 0x116   :  { %v548_v6 = vpop.f32.mrb[17].mxu0  ;;  %v827_v48 = vmul.f32 %v1833_v35, %v1833_v35 }
 0x117   :  { %v754_v37 = vadd.f32 %v753_v53, %v548_v6  ;;  %v825_v38 = vmul.f32 %v548_v6, %v548_v6  ;;  %v887_v39 = vadd.f32 %v886_v50, %v824_v34  ;;  %v1834_v40 = vpop.f32.mrb[18].mxu0 }
 0x118   :  { %v1585_v41 = vpack.c.bf16 %v1834_v40, %v1833_v35  ;;  %v551_v42 = vpop.f32.mrb[19].mxu0  ;;  %v828_v56 = vmul.f32 %v1834_v40, %v1834_v40  ;;  %v2315_v24 = vpop.f32.mrb[12].mxu1 }
 0x119   :  { %v888_v44 = vadd.f32 %v887_v39, %v825_v38  ;;  %v755_v45 = vadd.f32 %v754_v37, %v551_v42  ;;  %v826_v46 = vmul.f32 %v551_v42, %v551_v42  ;;  %v1580_v47 = vpack.c.bf16 %v551_v42, %v548_v6  ;;  %v2317_v26 = vpop.f32.mrb[13].mxu1 }
 0x11a   :  { %1736 = vst [vmem:[%s2523_s4 + $0x48] sm:$0xff] %v1585_v41   ;;  %v2319_v28 = vpop.f32.mrb[14].mxu1 }
 0x11b   :  { %v756_v49 = vadd.f32 %v1833_v35, %v755_v45  ;;  %v889_v51 = vadd.f32 %v888_v44, %v826_v46  ;;  %1735 = vst [vmem:[%s2523_s4 + $0x40] sm:$0xff] %v1580_v47   ;;  %v1655_v5 = vpack.c.bf16 %v2319_v28, %v2315_v24  ;;  %v2323_v30 = vpop.f32.mrb[15].mxu1 }
 0x11c   :  { %v1650_v6 = vpack.c.bf16 %v2323_v30, %v2317_v26 }
 0x11d   :  { %v890_v25 = vadd.f32 %v889_v51, %v827_v48  ;;  %v1837_v57 = vpop.f32.mrb[20].mxu0  ;;  %v757_v59 = vadd.f32 %v1834_v40, %v756_v49  ;;  %1750 = vst [vmem:[%s2523_s4 + $0xb8] sm:$0xff] %v1655_v5  }
 0x11e   :  { %v564_v62 = vpop.f32.mrb[21].mxu0  ;;  %v831_v20 = vmul.f32 %v1837_v57, %v1837_v57  ;;  %1749 = vst [vmem:[%s2523_s4 + $0xb0] sm:$0xff] %v1650_v6  }
 0x11f   :  { %v758_v1 = vadd.f32 %v757_v59, %v564_v62  ;;  %v829_v4 = vmul.f32 %v564_v62, %v564_v62  ;;  %v891_v8 = vadd.f32 %v890_v25, %v828_v56  ;;  %v1838_v9 = vpop.f32.mrb[22].mxu0 }
 0x120   :  { %v1595_v11 = vpack.c.bf16 %v1838_v9, %v1837_v57  ;;  %v567_v13 = vpop.f32.mrb[23].mxu0  ;;  %v832_v60 = vmul.f32 %v1838_v9, %v1838_v9  ;;  %v2339_v43 = vpop.f32.mrb[16].mxu1 }
 0x121   :  { %v892_v18 = vadd.f32 %v891_v8, %v829_v4  ;;  %v759_v3 = vadd.f32 %v758_v1, %v567_v13  ;;  %v830_v58 = vmul.f32 %v567_v13, %v567_v13  ;;  %v1590_v19 = vpack.c.bf16 %v567_v13, %v564_v62  ;;  %v2341_v44 = vpop.f32.mrb[17].mxu1 }
 0x122   :  { %1738 = vst [vmem:[%s2523_s4 + $0x58] sm:$0xff] %v1595_v11   ;;  %v2343_v49 = vpop.f32.mrb[18].mxu1 }
 0x123   :  { %v760_v22 = vadd.f32 %v1837_v57, %v759_v3  ;;  %v893_v23 = vadd.f32 %v892_v18, %v830_v58  ;;  %1737 = vst [vmem:[%s2523_s4 + $0x50] sm:$0xff] %v1590_v19   ;;  %v1665_v56 = vpack.c.bf16 %v2343_v49, %v2339_v43  ;;  %v2347_v25 = vpop.f32.mrb[19].mxu1 }
 0x124   :  { %v1660_v8 = vpack.c.bf16 %v2347_v25, %v2341_v44 }
 0x125   :  { %v894_v27 = vadd.f32 %v893_v23, %v831_v20  ;;  %v1841_v52 = vpop.f32.mrb[24].mxu0  ;;  %v761_v12 = vadd.f32 %v1838_v9, %v760_v22  ;;  %1752 = vst [vmem:[%s2523_s4 + $0xc8] sm:$0xff] %v1665_v56  }
 0x126   :  { %v580_v29 = vpop.f32.mrb[25].mxu0  ;;  %v835_v40 = vmul.f32 %v1841_v52, %v1841_v52  ;;  %1751 = vst [vmem:[%s2523_s4 + $0xc0] sm:$0xff] %v1660_v8  }
 0x127   :  { %v762_v31 = vadd.f32 %v761_v12, %v580_v29  ;;  %v833_v32 = vmul.f32 %v580_v29, %v580_v29  ;;  %v895_v34 = vadd.f32 %v894_v27, %v832_v60  ;;  %v1842_v50 = vpop.f32.mrb[26].mxu0  ;;  %v841_v27 = vmul.f32 %v2245_v15, %v2245_v15 }
 0x128   :  { %v1605_v35 = vpack.c.bf16 %v1842_v50, %v1841_v52  ;;  %v583_v53 = vpop.f32.mrb[27].mxu0  ;;  %v836_v45 = vmul.f32 %v1842_v50, %v1842_v50  ;;  %v2363_v19 = vpop.f32.mrb[20].mxu1 }
 0x129   :  { %v896_v16 = vadd.f32 %v895_v34, %v833_v32  ;;  %v763_v37 = vadd.f32 %v762_v31, %v583_v53  ;;  %v834_v38 = vmul.f32 %v583_v53, %v583_v53  ;;  %v1600_v39 = vpack.c.bf16 %v583_v53, %v580_v29  ;;  %v2365_v20 = vpop.f32.mrb[21].mxu1 }
 0x12a   :  { %1740 = vst [vmem:[%s2523_s4 + $0x68] sm:$0xff] %v1605_v35   ;;  %v842_v35 = vmul.f32 %v2251_v21, %v2251_v21 }
 0x12b   :  { %v764_v41 = vadd.f32 %v1841_v52, %v763_v37  ;;  %v897_v42 = vadd.f32 %v896_v16, %v834_v38  ;;  %1739 = vst [vmem:[%s2523_s4 + $0x60] sm:$0xff] %v1600_v39   ;;  %v2369_v52 = vpop.f32.mrb[22].mxu1  ;;  %v844_v38 = vmul.f32 %v2247_v7, %v2247_v7 }
 0x12c   :  { %v1675_v12 = vpack.c.bf16 %v2369_v52, %v2363_v19  ;;  %v2373_v29 = vpop.f32.mrb[23].mxu1 }
 0x12d   :  { %v898_v46 = vadd.f32 %v897_v42, %v835_v40  ;;  %v1845_v47 = vpop.f32.mrb[28].mxu0  ;;  %v765_v48 = vadd.f32 %v1842_v50, %v764_v41  ;;  %v1670_v32 = vpack.c.bf16 %v2373_v29, %v2365_v20  ;;  %v845_v40 = vmul.f32 %v2269_v10, %v2269_v10 }
 0x12e   :  { %v596_v51 = vpop.f32.mrb[29].mxu0  ;;  %v839_v18 = vmul.f32 %v1845_v47, %v1845_v47  ;;  %1754 = vst [vmem:[%s2523_s4 + $0xd8] sm:$0xff] %v1675_v12   ;;  %v853_v12 = vmul.f32 %v2317_v26, %v2317_v26 }
 0x12f   :  { %v766_v57 = vadd.f32 %v765_v48, %v596_v51  ;;  %v837_v59 = vmul.f32 %v596_v51, %v596_v51  ;;  %v899_v62 = vadd.f32 %v898_v46, %v836_v45  ;;  %v1846_v63 = vpop.f32.mrb[30].mxu0  ;;  %1753 = vst [vmem:[%s2523_s4 + $0xd0] sm:$0xff] %v1670_v32  }
 0x130   :  { %v1615_v1 = vpack.c.bf16 %v1846_v63, %v1845_v47  ;;  %v599_v4 = vpop.f32.mrb[31].mxu0  ;;  %v840_v22 = vmul.f32 %v1846_v63, %v1846_v63  ;;  %v2390_v16 = vpop.f32.mrb[24].mxu1 }
 0x131   :  { %v900_v9 = vadd.f32 %v899_v62, %v837_v59  ;;  %v767_v11 = vadd.f32 %v766_v57, %v599_v4  ;;  %v838_v13 = vmul.f32 %v599_v4, %v599_v4  ;;  %v1610_v17 = vpack.c.bf16 %v599_v4, %v596_v51  ;;  %v2392_v37 = vpop.f32.mrb[25].mxu1 }
 0x132   :  { %1742 = vst [vmem:[%s2523_s4 + $0x78] sm:$0xff] %v1615_v1   ;;  %v2399_v41 = vpop.f32.mrb[26].mxu1  ;;  %v846_v51 = vmul.f32 %v2275_v36, %v2275_v36  ;;  %v849_v4 = vmul.f32 %v2293_v55, %v2293_v55 }
 0x133   :  { %v768_v3 = vadd.f32 %v1845_v47, %v767_v11  ;;  %v901_v58 = vadd.f32 %v900_v9, %v838_v13  ;;  %1741 = vst [vmem:[%s2523_s4 + $0x70] sm:$0xff] %v1610_v17   ;;  %v1685_v42 = vpack.c.bf16 %v2399_v41, %v2390_v16 }
 0x135   :  { %v902_v23 = vadd.f32 %v901_v58, %v839_v18  ;;  %v769_v60 = vadd.f32 %v1846_v63, %v768_v3  ;;  %1756 = vst [vmem:[%s2523_s4 + $0xe8] sm:$0xff] %v1685_v42   ;;  %v848_v63 = vmul.f32 %v2271_v2, %v2271_v2  ;;  %v850_v3 = vmul.f32 %v2299_v0, %v2299_v0 }
 0x137   :  { %v770_v5 = vadd.f32 %v769_v60, %v2245_v15  ;;  %v903_v31 = vadd.f32 %v902_v23, %v840_v22  ;;  %v843_v15 = vmul.f32 %v2243_v14, %v2243_v14  ;;  %v852_v23 = vmul.f32 %v2295_v61, %v2295_v61 }
 0x139   :  { %v904_v34 = vadd.f32 %v903_v31, %v841_v27  ;;  %v771_v50 = vadd.f32 %v770_v5, %v2251_v21 }
 0x13b   :  { %v772_v53 = vadd.f32 %v2243_v14, %v771_v50  ;;  %v905_v6 = vadd.f32 %v904_v34, %v842_v35  ;;  %v2403_v14 = vpop.f32.mrb[27].mxu1  ;;  %v854_v34 = vmul.f32 %v2323_v30, %v2323_v30 }
 0x13c   :  { %v1680_v47 = vpack.c.bf16 %v2403_v14, %v2392_v37  ;;  %v2420_v59 = vpop.f32.mrb[28].mxu1 }
 0x13d   :  { %v906_v39 = vadd.f32 %v905_v6, %v843_v15  ;;  %v773_v21 = vadd.f32 %v2247_v7, %v772_v53  ;;  %v2422_v62 = vpop.f32.mrb[29].mxu1 }
 0x13e   :  { %1755 = vst [vmem:[%s2523_s4 + $0xe0] sm:$0xff] %v1680_v47   ;;  %v2429_v8 = vpop.f32.mrb[30].mxu1 }
 0x13f   :  { %v774_v45 = vadd.f32 %v773_v21, %v2269_v10  ;;  %v907_v46 = vadd.f32 %v906_v39, %v844_v38  ;;  %v847_v10 = vmul.f32 %v2267_v33, %v2267_v33  ;;  %v1695_v9 = vpack.c.bf16 %v2429_v8, %v2420_v59 }
 0x140   :  { %v858_v21 = vmul.f32 %v2347_v25, %v2347_v25 }
 0x141   :  { %v908_v7 = vadd.f32 %v907_v46, %v845_v40  ;;  %v775_v48 = vadd.f32 %v774_v45, %v2275_v36  ;;  %1758 = vst [vmem:[%s2523_s4 + $0xf8] sm:$0xff] %v1695_v9   ;;  %v866_v9 = vmul.f32 %v2403_v14, %v2403_v14 }
 0x143   :  { %v776_v56 = vadd.f32 %v2267_v33, %v775_v48  ;;  %v909_v57 = vadd.f32 %v908_v7, %v846_v51  ;;  %v2433_v33 = vpop.f32.mrb[31].mxu1  ;;  %v862_v51 = vmul.f32 %v2373_v29, %v2373_v29 }
 0x144   :  { %v1690_v17 = vpack.c.bf16 %v2433_v33, %v2422_v62 }
 0x145   :  { %v910_v1 = vadd.f32 %v909_v57, %v847_v10  ;;  %v777_v36 = vadd.f32 %v2271_v2, %v776_v56 }
 0x146   :  { %1757 = vst [vmem:[%s2523_s4 + $0xf0] sm:$0xff] %v1690_v17  }
 0x147   :  { %v778_v11 = vadd.f32 %v777_v36, %v2293_v55  ;;  %v911_v13 = vadd.f32 %v910_v1, %v848_v63  ;;  %v851_v55 = vmul.f32 %v2291_v54, %v2291_v54 }
 0x149   :  { %v912_v2 = vadd.f32 %v911_v13, %v849_v4  ;;  %v779_v18 = vadd.f32 %v778_v11, %v2299_v0 }
 0x14b   :  { %v780_v58 = vadd.f32 %v2291_v54, %v779_v18  ;;  %v913_v22 = vadd.f32 %v912_v2, %v850_v3  ;;  %v855_v54 = vmul.f32 %v2315_v24, %v2315_v24 }
 0x14d   :  { %v914_v60 = vadd.f32 %v913_v22, %v851_v55  ;;  %v781_v27 = vadd.f32 %v2295_v61, %v780_v58  ;;  %v856_v61 = vmul.f32 %v2319_v28, %v2319_v28  ;;  %v870_v58 = vmul.f32 %v2433_v33, %v2433_v33 }
 0x14f   :  { %v782_v0 = vadd.f32 %v781_v27, %v2317_v26  ;;  %v915_v5 = vadd.f32 %v914_v60, %v852_v23  ;;  %v857_v26 = vmul.f32 %v2341_v44, %v2341_v44 }
 0x151   :  { %v916_v31 = vadd.f32 %v915_v5, %v853_v12  ;;  %v783_v32 = vadd.f32 %v782_v0, %v2323_v30 }
 0x153   :  { %v784_v50 = vadd.f32 %v2315_v24, %v783_v32  ;;  %v917_v35 = vadd.f32 %v916_v31, %v854_v34  ;;  %v859_v24 = vmul.f32 %v2339_v43, %v2339_v43 }
 0x155   :  { %v918_v15 = vadd.f32 %v917_v35, %v855_v54  ;;  %v785_v53 = vadd.f32 %v2319_v28, %v784_v50  ;;  %v860_v28 = vmul.f32 %v2343_v49, %v2343_v49 }
 0x157   :  { %v786_v6 = vadd.f32 %v785_v53, %v2341_v44  ;;  %v919_v38 = vadd.f32 %v918_v15, %v856_v61  ;;  %v861_v44 = vmul.f32 %v2365_v20, %v2365_v20 }
 0x159   :  { %v920_v39 = vadd.f32 %v919_v38, %v857_v26  ;;  %v787_v30 = vadd.f32 %v786_v6, %v2347_v25 }
 0x15b   :  { %v788_v40 = vadd.f32 %v2339_v43, %v787_v30  ;;  %v921_v42 = vadd.f32 %v920_v39, %v858_v21  ;;  %v863_v43 = vmul.f32 %v2363_v19, %v2363_v19 }
 0x15d   :  { %v922_v45 = vadd.f32 %v921_v42, %v859_v24  ;;  %v789_v46 = vadd.f32 %v2343_v49, %v788_v40  ;;  %v864_v49 = vmul.f32 %v2369_v52, %v2369_v52 }
 0x15f   :  { %v790_v47 = vadd.f32 %v789_v46, %v2365_v20  ;;  %v923_v7 = vadd.f32 %v922_v45, %v860_v28  ;;  %v865_v20 = vmul.f32 %v2392_v37, %v2392_v37 }
 0x161   :  { %v924_v48 = vadd.f32 %v923_v7, %v861_v44  ;;  %v791_v25 = vadd.f32 %v790_v47, %v2373_v29 }
 0x163   :  { %v792_v10 = vadd.f32 %v2363_v19, %v791_v25  ;;  %v925_v56 = vadd.f32 %v924_v48, %v862_v51  ;;  %v867_v19 = vmul.f32 %v2390_v16, %v2390_v16 }
 0x165   :  { %v926_v57 = vadd.f32 %v925_v56, %v863_v43  ;;  %v793_v63 = vadd.f32 %v2369_v52, %v792_v10  ;;  %v868_v52 = vmul.f32 %v2399_v41, %v2399_v41 }
 0x167   :  { %v794_v1 = vadd.f32 %v793_v63, %v2392_v37  ;;  %v927_v36 = vadd.f32 %v926_v57, %v864_v49  ;;  %v869_v37 = vmul.f32 %v2422_v62, %v2422_v62 }
 0x169   :  { %v928_v4 = vadd.f32 %v927_v36, %v865_v20  ;;  %v795_v29 = vadd.f32 %v794_v1, %v2403_v14 }
 0x16b   :  { %v796_v11 = vadd.f32 %v2390_v16, %v795_v29  ;;  %v929_v13 = vadd.f32 %v928_v4, %v866_v9  ;;  %v871_v16 = vmul.f32 %v2420_v59, %v2420_v59 }
 0x16d   :  { %v930_v17 = vadd.f32 %v929_v13, %v867_v19  ;;  %v797_v2 = vadd.f32 %v2399_v41, %v796_v11  ;;  %v872_v41 = vmul.f32 %v2429_v8, %v2429_v8 }
 0x16f   :  { %v798_v18 = vadd.f32 %v797_v2, %v2422_v62  ;;  %v931_v3 = vadd.f32 %v930_v17, %v868_v52 }
 0x171   :  { %v932_v55 = vadd.f32 %v931_v3, %v869_v37  ;;  %v799_v14 = vadd.f32 %v798_v18, %v2433_v33 }
 0x173   :  { %v800_v22 = vadd.f32 %v2420_v59, %v799_v14  ;;  %v933_v23 = vadd.f32 %v932_v55, %v870_v58 }
 0x175   :  { %v801_v60 = vadd.f32 %v2429_v8, %v800_v22  ;;  %v934_v27 = vadd.f32 %v933_v23, %v871_v16 }
 0x177   :  { %v802_v62 = vrot.slane %v801_v60, 4  ;;  %v935_v12 = vadd.f32 %v934_v27, %v872_v41 }
 0x179   :  { %v803_v0 = vadd.f32 %v802_v62, %v801_v60  ;;  %v936_v5 = vrot.slane %v935_v12, 4 }
 0x17b   :  { %v804_v31 = vrot.slane %v803_v0, 2  ;;  %v937_v32 = vadd.f32 %v936_v5, %v935_v12 }
 0x17d   :  { %v805_v34 = vadd.f32 %v804_v31, %v803_v0  ;;  %v938_v33 = vrot.slane %v937_v32, 2 }
 0x17f   :  { %v806_v54 = vrot.slane %v805_v34, 1  ;;  %v939_v50 = vadd.f32 %v938_v33, %v937_v32 }
 0x181   :  { %v807_v35 = vadd.f32 %v806_v54, %v805_v34  ;;  %v940_v61 = vrot.slane %v939_v50, 1 }
 0x183   :  { %808 = vst [vmem:[%s2524_s5] sm:$0x1] %v807_v35  ;;  %v941_v59 = vadd.f32 %v940_v61, %v939_v50 }
 0x185   :  { %942 = vst [vmem:[%s2524_s5 + $0x1] sm:$0x1] %v941_v59 }

</bundles_post_ra>
